<compile_context>
chip_gen: v6e
topology: v6e:2x2x1
jax: 0.10.0
libtpu: 0.0.40
codegen_flags: <defaults>
</compile_context>

<pallas_src>
import functools

import jax
import jax.numpy as jnp
from jax.experimental import pallas as pl
from jax.experimental.pallas import tpu as pltpu


# ----------------------------------------------------------------------------
# One-time parameter prep (plain JAX): column "band" matrices + BN folding.
# ----------------------------------------------------------------------------
def _conv_col_band(w_kj, w_out):
    """Band matrix for a 3-wide conv (padding=1) along the width axis.

    w_kj: (3, Ci, Co) weight slice for a fixed vertical tap ki, indexed by kj.
    Returns B of shape (w_out*Ci, w_out*Co) so that out_row = in_row @ B with
    rows flattened as [w, c] -> w*C + c; the zero padding at w = -1 / w = w_out
    is folded into the band structure (those taps are simply dropped).
    """
    ci, co = w_kj.shape[1], w_kj.shape[2]
    bi = jnp.arange(w_out)[:, None]      # input column  (w + kj - 1)
    bo = jnp.arange(w_out)[None, :]      # output column (w)
    kj = bi - bo + 1
    valid = (kj >= 0) & (kj <= 2)
    g = w_kj[jnp.clip(kj, 0, 2)]                       # (Wi, Wo, Ci, Co)
    g = jnp.where(valid[:, :, None, None], g, 0.0)
    return g.transpose(0, 2, 1, 3).reshape(w_out * ci, w_out * co)


def _upconv_col_band(w_kj, w_in):
    """Band matrix for one vertical tap of the stride-2 transposed conv.

    w_kj: (3, Ci, Co) weight slice for a fixed ki, indexed by kj.
    Maps an input row (w_in*Ci) to an upsampled output row (2*w_in*Co):
      out[2c + pc, co] += in[c + dc, ci] * w_kj[pc + 1 - 2*dc, ci, co]
    """
    ci, co = w_kj.shape[1], w_kj.shape[2]
    bi = jnp.arange(w_in)[:, None]        # input column  (c + dc)
    bo = jnp.arange(2 * w_in)[None, :]    # output column (2c + pc)
    c, pc = bo // 2, bo % 2
    dc = bi - c
    kj = pc + 1 - 2 * dc
    valid = (dc >= 0) & (dc <= 1) & (kj >= 0) & (kj <= 2)
    g = w_kj[jnp.clip(kj, 0, 2)]                       # (Wi, 2Wi, Ci, Co)
    g = jnp.where(valid[:, :, None, None], g, 0.0)
    return g.transpose(0, 2, 1, 3).reshape(w_in * ci, 2 * w_in * co)


def prepare_up_params(params, W, eps=1e-5):
    """Re-layout PyTorch-style parameters into MXU-friendly kernel inputs.

    Returns:
      bup:  (2*W*Cin, 2*Wo*Cout) bf16  -- K/N-stacked up-conv band:
              [[B_even, B_odd_k2], [0, B_odd_k0]]
      cb:   (2, 2, 2*Wo*Cout, 2*Wo*Cout) bf16 -- per conv layer:
              [0] = [[c1, c0], [c2, c1]]   (LHS = [even | odd])
              [1] = [[c0, 0 ], [0,  c2]]   (LHS = [odd_prev | even_next])
      vec:  (5, 2*Wo*Cout) f32 -- up-conv bias, (scale, shift) per conv layer
            (BatchNorm folded with eval-mode running statistics).
    """
    Wo = 2 * W
    # ConvTranspose2d weight (Cin, Cout, kh, kw) -> (ki, kj, Cin, Cout).
    wt = jnp.transpose(params["wt_up"], (2, 3, 0, 1))
    # Sub-pixel decomposition (stride 2, pad 1, output_padding 1):
    #   even output rows 2r   use input row r   with ki = 1
    #   odd  output rows 2r+1 use input row r   with ki = 2
    #                          and input row r+1 with ki = 0
    b_e = _upconv_col_band(wt[1], W)       # (W*Cin, Wo*Cout)
    b_o1 = _upconv_col_band(wt[2], W)
    b_o2 = _upconv_col_band(wt[0], W)
    zeros_b = jnp.zeros_like(b_e)
    bup = jnp.concatenate(
        [jnp.concatenate([b_e, b_o1], axis=1),
         jnp.concatenate([zeros_b, b_o2], axis=1)], axis=0).astype(jnp.bfloat16)

    # TODO(synk): BatchNorm is folded with eval-mode (running-stat) semantics;
    # training-mode batch statistics are not computed.
    vecs = [jnp.tile(params["b_up"], 2 * Wo)]
    cbs = []
    for layer in ("1", "2"):
        w_t = jnp.transpose(params["w" + layer], (2, 3, 1, 0))   # (ki,kj,ci,co)
        c0 = _conv_col_band(w_t[0], Wo)
        c1 = _conv_col_band(w_t[1], Wo)
        c2 = _conv_col_band(w_t[2], Wo)
        z = jnp.zeros_like(c0)
        r_main = jnp.concatenate(
            [jnp.concatenate([c1, c0], axis=1),
             jnp.concatenate([c2, c1], axis=1)], axis=0)
        r_shift = jnp.concatenate(
            [jnp.concatenate([c0, z], axis=1),
             jnp.concatenate([z, c2], axis=1)], axis=0)
        cbs.append(jnp.stack([r_main, r_shift]))
        scale = params["gamma" + layer] * jax.lax.rsqrt(params["var" + layer] + eps)
        shift = (scale * (params["b" + layer] - params["mean" + layer])
                 + params["beta" + layer])
        vecs.append(jnp.tile(scale, 2 * Wo))
        vecs.append(jnp.tile(shift, 2 * Wo))
    cb = jnp.stack(cbs).astype(jnp.bfloat16)       # (2, 2, 2CW, 2CW)
    vec = jnp.stack(vecs).astype(jnp.float32)      # (5, 2CW)
    return bup, cb, vec


# ----------------------------------------------------------------------------
# Fused Pallas kernel: up-conv + (conv3x3 + BN + ReLU) * 2, whole batch in one
# grid step.  Rows = (batch, image_row) stacked; lanes = (parity, w, cout).
# All +/-1-row shifted operands are pltpu.roll + boundary masks (no scratch).
# ----------------------------------------------------------------------------
def _up_fused_kernel(x_ref, bup_ref, cb_ref, vec_ref, o_ref, *, H):
    f32, bf16 = jnp.float32, jnp.bfloat16
    CW = o_ref.shape[1] // 2          # Wo * Cout (lane width of one parity)

    def dot(a, b):
        # bf16 operands, f32 accumulation on the MXU.
        return jnp.dot(a.astype(bf16), b, preferred_element_type=f32)

    def shift_prev(v):
        # p[i] = v[i-1] within each H-row image block, zero at local row 0.
        r = jax.lax.broadcasted_iota(jnp.int32, v.shape, 0) % H
        return jnp.where(r == 0, 0.0, pltpu.roll(v, shift=1, axis=0))

    def shift_next(v):
        # p[i] = v[i+1] within each H-row image block, zero at local row H-1.
        r = jax.lax.broadcasted_iota(jnp.int32, v.shape, 0) % H
        return jnp.where(r == H - 1, 0.0,
                         pltpu.roll(v, shift=v.shape[0] - 1, axis=0))

    b_up = vec_ref[0:1, :]
    s1, t1 = vec_ref[1:2, :], vec_ref[2:3, :]
    s2, t2 = vec_ref[3:4, :], vec_ref[4:5, :]

    # ---- ConvTranspose2d(3, stride=2, pad=1, output_pad=1): one K=2*W*Cin,
    #      N=2*Wo*Cout matmul (rows r and r+1 K-stacked, parity N-stacked).
    x_r = x_ref[...]                                   # (M, W*Cin) f32
    x_n = shift_next(x_r)                              # rows r+1 (zero at edge)
    u = dot(jnp.concatenate([x_r, x_n], axis=1), bup_ref[...]) + b_up
    # u[:, :CW] = up-conv output rows 2r, u[:, CW:] = rows 2r+1.

    # ---- conv1 (3x3, pad 1) + BN + ReLU ------------------------------------
    sh1 = jnp.concatenate([shift_prev(u[:, CW:]), shift_next(u[:, :CW])], axis=1)
    a1 = dot(u, cb_ref[0, 0]) + dot(sh1, cb_ref[0, 1])
    a1 = jnp.maximum(a1 * s1 + t1, 0.0)                # (M, 2CW) f32

    # ---- conv2 (3x3, pad 1) + BN + ReLU ------------------------------------
    sh2 = jnp.concatenate([shift_prev(a1[:, CW:]), shift_next(a1[:, :CW])], axis=1)
    a2 = dot(a1, cb_ref[1, 0]) + dot(sh2, cb_ref[1, 1])
    o_ref[...] = jnp.maximum(a2 * s2 + t2, 0.0).astype(o_ref.dtype)


def up_fused_call(x_rows, bup, cb, vec, H):
    M, K_in = x_rows.shape
    CW2 = bup.shape[1]
    kernel = functools.partial(_up_fused_kernel, H=H)
    return pl.pallas_call(
        kernel,
        out_shape=jax.ShapeDtypeStruct((M, CW2), jnp.float32),
        grid=(1,),
        in_specs=[
            pl.BlockSpec((M, K_in), lambda i: (0, 0)),
            pl.BlockSpec(bup.shape, lambda i: (0, 0)),
            pl.BlockSpec(cb.shape, lambda i: (0, 0, 0, 0)),
            pl.BlockSpec(vec.shape, lambda i: (0, 0)),
        ],
        out_specs=pl.BlockSpec((M, CW2), lambda i: (0, 0)),
        compiler_params=pltpu.CompilerParams(
            dimension_semantics=("arbitrary",)),
    )(x_rows, bup, cb, vec)


def up_forward(x1_nchw, prepared):
    """Forward pass of `up` (bilinear=False, op='none'); x1 is NCHW like PyTorch."""
    bup, cb, vec = prepared
    N, Cin, H, W = x1_nchw.shape
    Cout = cb.shape[-1] // (4 * W)
    # NCHW -> (N*H, W*Cin) row bank; no halo pad (handled in-kernel by masks).
    x_rows = jnp.transpose(x1_nchw, (0, 2, 3, 1)).reshape(N * H, W * Cin)
    y = up_fused_call(x_rows, bup, cb, vec, H)          # (N*H, 2*Wo*Cout)
    # rows = (n, h), lanes = (parity, w, c)  ->  NHWC with row index 2h+parity.
    y = y.reshape(N, 2 * H, 2 * W, Cout)
    return jnp.transpose(y, (0, 3, 1, 2))               # NHWC -> NCHW


# ----------------------------------------------------------------------------
# Plain-JAX reference (same eval-mode BN semantics) and parameter construction.
# ----------------------------------------------------------------------------
def up_reference(x_nchw, params, eps=1e-5):
    hp = jax.lax.Precision.HIGHEST
    # ConvTranspose2d == dilated conv with flipped, in/out-swapped weights.
    w_up = jnp.transpose(params["wt_up"][:, :, ::-1, ::-1], (1, 0, 2, 3))
    y = jax.lax.conv_general_dilated(
        x_nchw, w_up, window_strides=(1, 1), padding=((1, 2), (1, 2)),
        lhs_dilation=(2, 2), dimension_numbers=("NCHW", "OIHW", "NCHW"),
        precision=hp)
    y = y + params["b_up"][None, :, None, None]
    for layer in ("1", "2"):
        y = jax.lax.conv_general_dilated(
            y, params["w" + layer], window_strides=(1, 1),
            padding=((1, 1), (1, 1)),
            dimension_numbers=("NCHW", "OIHW", "NCHW"), precision=hp)
        y = y + params["b" + layer][None, :, None, None]
        scale = params["gamma" + layer] / jnp.sqrt(params["var" + layer] + eps)
        y = ((y - params["mean" + layer][None, :, None, None])
             * scale[None, :, None, None]
             + params["beta" + layer][None, :, None, None])
        y = jnp.maximum(y, 0.0)
    return y


def make_params(key, in_ch, out_ch):
    ks = jax.random.split(key, 12)
    p = {}
    # ConvTranspose2d weight: (in_ch, out_ch, 3, 3), bias: (out_ch,)
    p["wt_up"] = 0.1 * jax.random.normal(ks[0], (in_ch, out_ch, 3, 3), jnp.float32)
    p["b_up"] = 0.05 * jax.random.normal(ks[1], (out_ch,), jnp.float32)
    # double_conv(out_ch, out_ch): two Conv2d(out_ch, out_ch, 3, pad=1) + BN
    for i, layer in enumerate(("1", "2")):
        base = 2 + 5 * i
        p["w" + layer] = 0.1 * jax.random.normal(ks[base], (out_ch, out_ch, 3, 3), jnp.float32)
        p["b" + layer] = 0.05 * jax.random.normal(ks[base + 1], (out_ch,), jnp.float32)
        p["gamma" + layer] = 1.0 + 0.1 * jax.random.normal(ks[base + 2], (out_ch,), jnp.float32)
        p["beta" + layer] = 0.1 * jax.random.normal(ks[base + 3], (out_ch,), jnp.float32)
        p["mean" + layer] = 0.05 * jax.random.normal(ks[base + 4], (out_ch,), jnp.float32)
        p["var" + layer] = jnp.ones((out_ch,), jnp.float32)
    return p


if __name__ == "__main__":
    in_ch, out_ch = 8, 4
    N, H, W = 2, 16, 16

    key = jax.random.PRNGKey(0)
    kx, kp = jax.random.split(key)
    x1 = jax.random.normal(kx, (N, in_ch, H, W), jnp.float32)  # NCHW, like PyTorch
    params = make_params(kp, in_ch, out_ch)

    # One-time parameter prep (bf16 band matrices + folded BN), hoisted out of
    # the per-step forward.
    prepared = prepare_up_params(params, W)

    out = jax.jit(up_forward)(x1, prepared)
    out = jax.block_until_ready(out)
    assert out.shape == (N, out_ch, 2 * H, 2 * W), out.shape
    assert bool(jnp.all(jnp.isfinite(out)))

    # Cross-check against a plain-JAX/XLA f32 reference of the same module
    # (tolerance covers bf16 MXU operands with f32 accumulation).
    ref = up_reference(x1, params)
    err = float(jnp.max(jnp.abs(out - ref)))
    assert err < 3e-2, f"kernel/reference mismatch: max abs err = {err}"
    print("KERNEL_OK")
</pallas_src>

<mosaic_0001>
module attributes {stable_mosaic.version = 11 : i64} {
  func.func @_up_fused_kernel(%arg0: i32, %arg1: memref<32x128xf32, #tpu.memory_space<vmem>>, %arg2: memref<256x256xbf16, #tpu.memory_space<vmem>>, %arg3: memref<2x2x256x256xbf16, #tpu.memory_space<vmem>>, %arg4: memref<5x256xf32, #tpu.memory_space<vmem>>, %arg5: memref<32x256xf32, #tpu.memory_space<vmem>>) attributes {dimension_semantics = [#tpu.dimension_semantics<arbitrary>], iteration_bounds = array<i64: 1>, scalar_prefetch = 0 : i64, scratch_operands = 0 : i64, tpu.core_type = #tpu.core_type<tc>, window_params = [{pipeline_mode = #tpu.pipeline_mode<synchronous>, transform_indices = @transform_0, window_bounds = array<i64: 32, 128>}, {pipeline_mode = #tpu.pipeline_mode<synchronous>, transform_indices = @transform_1, window_bounds = array<i64: 256, 256>}, {pipeline_mode = #tpu.pipeline_mode<synchronous>, transform_indices = @transform_2, window_bounds = array<i64: 2, 2, 256, 256>}, {pipeline_mode = #tpu.pipeline_mode<synchronous>, transform_indices = @transform_3, window_bounds = array<i64: 5, 256>}, {pipeline_mode = #tpu.pipeline_mode<synchronous>, transform_indices = @transform_4, window_bounds = array<i64: 32, 256>}]} {
    %c0 = arith.constant 0 : index
    %c0_0 = arith.constant 0 : index
    %0 = vector.load %arg4[%c0, %c0_0] : memref<5x256xf32, #tpu.memory_space<vmem>>, vector<1x256xf32>
    %c1 = arith.constant 1 : index
    %c0_1 = arith.constant 0 : index
    %1 = vector.load %arg4[%c1, %c0_1] : memref<5x256xf32, #tpu.memory_space<vmem>>, vector<1x256xf32>
    %c2 = arith.constant 2 : index
    %c0_2 = arith.constant 0 : index
    %2 = vector.load %arg4[%c2, %c0_2] : memref<5x256xf32, #tpu.memory_space<vmem>>, vector<1x256xf32>
    %c3 = arith.constant 3 : index
    %c0_3 = arith.constant 0 : index
    %3 = vector.load %arg4[%c3, %c0_3] : memref<5x256xf32, #tpu.memory_space<vmem>>, vector<1x256xf32>
    %c4 = arith.constant 4 : index
    %c0_4 = arith.constant 0 : index
    %4 = vector.load %arg4[%c4, %c0_4] : memref<5x256xf32, #tpu.memory_space<vmem>>, vector<1x256xf32>
    %c0_5 = arith.constant 0 : index
    %c0_6 = arith.constant 0 : index
    %5 = vector.load %arg1[%c0_5, %c0_6] : memref<32x128xf32, #tpu.memory_space<vmem>>, vector<32x128xf32>
    %6 = tpu.iota {dimensions = array<i32: 0>} : vector<32x128xi32>
    %c16_i32 = arith.constant 16 : i32
    %c0_i32 = arith.constant 0 : i32
    %7 = arith.cmpi eq, %c16_i32, %c0_i32 : i32
    %c1_i32 = arith.constant 1 : i32
    %8 = arith.select %7, %c1_i32, %c16_i32 : i32
    %9 = vector.broadcast %8 : i32 to vector<32x128xi32>
    %10 = arith.remsi %6, %9 : vector<32x128xi32>
    %c0_i32_7 = arith.constant 0 : i32
    %11 = vector.broadcast %c0_i32_7 : i32 to vector<32x128xi32>
    %12 = arith.cmpi ne, %10, %11 : vector<32x128xi32>
    %c0_i32_8 = arith.constant 0 : i32
    %13 = vector.broadcast %c0_i32_8 : i32 to vector<32x128xi32>
    %14 = arith.cmpi slt, %10, %13 : vector<32x128xi32>
    %c0_i32_9 = arith.constant 0 : i32
    %15 = arith.cmpi slt, %8, %c0_i32_9 : i32
    %16 = vector.broadcast %15 : i1 to vector<32x128xi1>
    %17 = vector.broadcast %16 : vector<32x128xi1> to vector<32x128xi1>
    %18 = arith.xori %14, %17 : vector<32x128xi1>
    %19 = arith.andi %18, %12 : vector<32x128xi1>
    %20 = vector.broadcast %8 : i32 to vector<32x128xi32>
    %21 = arith.addi %10, %20 : vector<32x128xi32>
    %22 = arith.select %19, %21, %10 : vector<32x128xi1>, vector<32x128xi32>
    %c15_i32 = arith.constant 15 : i32
    %23 = vector.broadcast %c15_i32 : i32 to vector<32x128xi32>
    %24 = arith.cmpi eq, %22, %23 : vector<32x128xi32>
    %c31_i32 = arith.constant 31 : i32
    %25 = tpu.dynamic_rotate %5 by %c31_i32 dim 0 : vector<32x128xf32>, i32 -> vector<32x128xf32>
    %cst = arith.constant 0.000000e+00 : f32
    %26 = vector.broadcast %cst : f32 to vector<32x128xf32>
    %27 = arith.select %24, %26, %25 : vector<32x128xi1>, vector<32x128xf32>
    %28 = tpu.concatenate %5, %27 in 1 : vector<32x128xf32>, vector<32x128xf32> -> vector<32x256xf32>
    %c0_10 = arith.constant 0 : index
    %c0_11 = arith.constant 0 : index
    %29 = vector.load %arg2[%c0_10, %c0_11] : memref<256x256xbf16, #tpu.memory_space<vmem>>, vector<256x256xbf16>
    %30 = arith.truncf %28 : vector<32x256xf32> to vector<32x256xbf16>
    %cst_12 = arith.constant dense<0.000000e+00> : vector<32x256xf32>
    %31 = tpu.matmul %30, %29, %cst_12 {dimension_numbers = #tpu.dot_dimension_numbers<[1], [0], [0], [1], [0, 0, 1, 1], [], []>} : vector<32x256xbf16>, vector<256x256xbf16>, vector<32x256xf32> -> vector<32x256xf32>
    %32 = vector.broadcast %0 : vector<1x256xf32> to vector<32x256xf32>
    %33 = arith.addf %31, %32 : vector<32x256xf32>
    %34 = vector.extract_strided_slice %33 {offsets = [0, 128], sizes = [32, 128], strides = [1, 1]} : vector<32x256xf32> to vector<32x128xf32>
    %35 = tpu.iota {dimensions = array<i32: 0>} : vector<32x128xi32>
    %c16_i32_13 = arith.constant 16 : i32
    %c0_i32_14 = arith.constant 0 : i32
    %36 = arith.cmpi eq, %c16_i32_13, %c0_i32_14 : i32
    %c1_i32_15 = arith.constant 1 : i32
    %37 = arith.select %36, %c1_i32_15, %c16_i32_13 : i32
    %38 = vector.broadcast %37 : i32 to vector<32x128xi32>
    %39 = arith.remsi %35, %38 : vector<32x128xi32>
    %c0_i32_16 = arith.constant 0 : i32
    %40 = vector.broadcast %c0_i32_16 : i32 to vector<32x128xi32>
    %41 = arith.cmpi ne, %39, %40 : vector<32x128xi32>
    %c0_i32_17 = arith.constant 0 : i32
    %42 = vector.broadcast %c0_i32_17 : i32 to vector<32x128xi32>
    %43 = arith.cmpi slt, %39, %42 : vector<32x128xi32>
    %c0_i32_18 = arith.constant 0 : i32
    %44 = arith.cmpi slt, %37, %c0_i32_18 : i32
    %45 = vector.broadcast %44 : i1 to vector<32x128xi1>
    %46 = vector.broadcast %45 : vector<32x128xi1> to vector<32x128xi1>
    %47 = arith.xori %43, %46 : vector<32x128xi1>
    %48 = arith.andi %47, %41 : vector<32x128xi1>
    %49 = vector.broadcast %37 : i32 to vector<32x128xi32>
    %50 = arith.addi %39, %49 : vector<32x128xi32>
    %51 = arith.select %48, %50, %39 : vector<32x128xi1>, vector<32x128xi32>
    %c0_i32_19 = arith.constant 0 : i32
    %52 = vector.broadcast %c0_i32_19 : i32 to vector<32x128xi32>
    %53 = arith.cmpi eq, %51, %52 : vector<32x128xi32>
    %c1_i32_20 = arith.constant 1 : i32
    %54 = tpu.dynamic_rotate %34 by %c1_i32_20 dim 0 : vector<32x128xf32>, i32 -> vector<32x128xf32>
    %cst_21 = arith.constant 0.000000e+00 : f32
    %55 = vector.broadcast %cst_21 : f32 to vector<32x128xf32>
    %56 = arith.select %53, %55, %54 : vector<32x128xi1>, vector<32x128xf32>
    %57 = vector.extract_strided_slice %33 {offsets = [0, 0], sizes = [32, 128], strides = [1, 1]} : vector<32x256xf32> to vector<32x128xf32>
    %58 = tpu.iota {dimensions = array<i32: 0>} : vector<32x128xi32>
    %c16_i32_22 = arith.constant 16 : i32
    %c0_i32_23 = arith.constant 0 : i32
    %59 = arith.cmpi eq, %c16_i32_22, %c0_i32_23 : i32
    %c1_i32_24 = arith.constant 1 : i32
    %60 = arith.select %59, %c1_i32_24, %c16_i32_22 : i32
    %61 = vector.broadcast %60 : i32 to vector<32x128xi32>
    %62 = arith.remsi %58, %61 : vector<32x128xi32>
    %c0_i32_25 = arith.constant 0 : i32
    %63 = vector.broadcast %c0_i32_25 : i32 to vector<32x128xi32>
    %64 = arith.cmpi ne, %62, %63 : vector<32x128xi32>
    %c0_i32_26 = arith.constant 0 : i32
    %65 = vector.broadcast %c0_i32_26 : i32 to vector<32x128xi32>
    %66 = arith.cmpi slt, %62, %65 : vector<32x128xi32>
    %c0_i32_27 = arith.constant 0 : i32
    %67 = arith.cmpi slt, %60, %c0_i32_27 : i32
    %68 = vector.broadcast %67 : i1 to vector<32x128xi1>
    %69 = vector.broadcast %68 : vector<32x128xi1> to vector<32x128xi1>
    %70 = arith.xori %66, %69 : vector<32x128xi1>
    %71 = arith.andi %70, %64 : vector<32x128xi1>
    %72 = vector.broadcast %60 : i32 to vector<32x128xi32>
    %73 = arith.addi %62, %72 : vector<32x128xi32>
    %74 = arith.select %71, %73, %62 : vector<32x128xi1>, vector<32x128xi32>
    %c15_i32_28 = arith.constant 15 : i32
    %75 = vector.broadcast %c15_i32_28 : i32 to vector<32x128xi32>
    %76 = arith.cmpi eq, %74, %75 : vector<32x128xi32>
    %c31_i32_29 = arith.constant 31 : i32
    %77 = tpu.dynamic_rotate %57 by %c31_i32_29 dim 0 : vector<32x128xf32>, i32 -> vector<32x128xf32>
    %cst_30 = arith.constant 0.000000e+00 : f32
    %78 = vector.broadcast %cst_30 : f32 to vector<32x128xf32>
    %79 = arith.select %76, %78, %77 : vector<32x128xi1>, vector<32x128xf32>
    %80 = tpu.concatenate %56, %79 in 1 : vector<32x128xf32>, vector<32x128xf32> -> vector<32x256xf32>
    %c0_31 = arith.constant 0 : index
    %c0_32 = arith.constant 0 : index
    %c0_33 = arith.constant 0 : index
    %c0_34 = arith.constant 0 : index
    %81 = vector.load %arg3[%c0_31, %c0_32, %c0_33, %c0_34] : memref<2x2x256x256xbf16, #tpu.memory_space<vmem>>, vector<1x1x256x256xbf16>
    %82 = vector.shape_cast %81 : vector<1x1x256x256xbf16> to vector<256x256xbf16>
    %83 = arith.truncf %33 : vector<32x256xf32> to vector<32x256xbf16>
    %cst_35 = arith.constant dense<0.000000e+00> : vector<32x256xf32>
    %84 = tpu.matmul %83, %82, %cst_35 {dimension_numbers = #tpu.dot_dimension_numbers<[1], [0], [0], [1], [0, 0, 1, 1], [], []>} : vector<32x256xbf16>, vector<256x256xbf16>, vector<32x256xf32> -> vector<32x256xf32>
    %c0_36 = arith.constant 0 : index
    %c1_37 = arith.constant 1 : index
    %c0_38 = arith.constant 0 : index
    %c0_39 = arith.constant 0 : index
    %85 = vector.load %arg3[%c0_36, %c1_37, %c0_38, %c0_39] : memref<2x2x256x256xbf16, #tpu.memory_space<vmem>>, vector<1x1x256x256xbf16>
    %86 = vector.shape_cast %85 : vector<1x1x256x256xbf16> to vector<256x256xbf16>
    %87 = arith.truncf %80 : vector<32x256xf32> to vector<32x256xbf16>
    %cst_40 = arith.constant dense<0.000000e+00> : vector<32x256xf32>
    %88 = tpu.matmul %87, %86, %cst_40 {dimension_numbers = #tpu.dot_dimension_numbers<[1], [0], [0], [1], [0, 0, 1, 1], [], []>} : vector<32x256xbf16>, vector<256x256xbf16>, vector<32x256xf32> -> vector<32x256xf32>
    %89 = arith.addf %84, %88 : vector<32x256xf32>
    %90 = vector.broadcast %1 : vector<1x256xf32> to vector<32x256xf32>
    %91 = arith.mulf %89, %90 : vector<32x256xf32>
    %92 = vector.broadcast %2 : vector<1x256xf32> to vector<32x256xf32>
    %93 = arith.addf %91, %92 : vector<32x256xf32>
    %cst_41 = arith.constant 0.000000e+00 : f32
    %94 = vector.broadcast %cst_41 : f32 to vector<32x256xf32>
    %95 = arith.maximumf %93, %94 : vector<32x256xf32>
    %96 = vector.extract_strided_slice %95 {offsets = [0, 128], sizes = [32, 128], strides = [1, 1]} : vector<32x256xf32> to vector<32x128xf32>
    %97 = tpu.iota {dimensions = array<i32: 0>} : vector<32x128xi32>
    %c16_i32_42 = arith.constant 16 : i32
    %c0_i32_43 = arith.constant 0 : i32
    %98 = arith.cmpi eq, %c16_i32_42, %c0_i32_43 : i32
    %c1_i32_44 = arith.constant 1 : i32
    %99 = arith.select %98, %c1_i32_44, %c16_i32_42 : i32
    %100 = vector.broadcast %99 : i32 to vector<32x128xi32>
    %101 = arith.remsi %97, %100 : vector<32x128xi32>
    %c0_i32_45 = arith.constant 0 : i32
    %102 = vector.broadcast %c0_i32_45 : i32 to vector<32x128xi32>
    %103 = arith.cmpi ne, %101, %102 : vector<32x128xi32>
    %c0_i32_46 = arith.constant 0 : i32
    %104 = vector.broadcast %c0_i32_46 : i32 to vector<32x128xi32>
    %105 = arith.cmpi slt, %101, %104 : vector<32x128xi32>
    %c0_i32_47 = arith.constant 0 : i32
    %106 = arith.cmpi slt, %99, %c0_i32_47 : i32
    %107 = vector.broadcast %106 : i1 to vector<32x128xi1>
    %108 = vector.broadcast %107 : vector<32x128xi1> to vector<32x128xi1>
    %109 = arith.xori %105, %108 : vector<32x128xi1>
    %110 = arith.andi %109, %103 : vector<32x128xi1>
    %111 = vector.broadcast %99 : i32 to vector<32x128xi32>
    %112 = arith.addi %101, %111 : vector<32x128xi32>
    %113 = arith.select %110, %112, %101 : vector<32x128xi1>, vector<32x128xi32>
    %c0_i32_48 = arith.constant 0 : i32
    %114 = vector.broadcast %c0_i32_48 : i32 to vector<32x128xi32>
    %115 = arith.cmpi eq, %113, %114 : vector<32x128xi32>
    %c1_i32_49 = arith.constant 1 : i32
    %116 = tpu.dynamic_rotate %96 by %c1_i32_49 dim 0 : vector<32x128xf32>, i32 -> vector<32x128xf32>
    %cst_50 = arith.constant 0.000000e+00 : f32
    %117 = vector.broadcast %cst_50 : f32 to vector<32x128xf32>
    %118 = arith.select %115, %117, %116 : vector<32x128xi1>, vector<32x128xf32>
    %119 = vector.extract_strided_slice %95 {offsets = [0, 0], sizes = [32, 128], strides = [1, 1]} : vector<32x256xf32> to vector<32x128xf32>
    %120 = tpu.iota {dimensions = array<i32: 0>} : vector<32x128xi32>
    %c16_i32_51 = arith.constant 16 : i32
    %c0_i32_52 = arith.constant 0 : i32
    %121 = arith.cmpi eq, %c16_i32_51, %c0_i32_52 : i32
    %c1_i32_53 = arith.constant 1 : i32
    %122 = arith.select %121, %c1_i32_53, %c16_i32_51 : i32
    %123 = vector.broadcast %122 : i32 to vector<32x128xi32>
    %124 = arith.remsi %120, %123 : vector<32x128xi32>
    %c0_i32_54 = arith.constant 0 : i32
    %125 = vector.broadcast %c0_i32_54 : i32 to vector<32x128xi32>
    %126 = arith.cmpi ne, %124, %125 : vector<32x128xi32>
    %c0_i32_55 = arith.constant 0 : i32
    %127 = vector.broadcast %c0_i32_55 : i32 to vector<32x128xi32>
    %128 = arith.cmpi slt, %124, %127 : vector<32x128xi32>
    %c0_i32_56 = arith.constant 0 : i32
    %129 = arith.cmpi slt, %122, %c0_i32_56 : i32
    %130 = vector.broadcast %129 : i1 to vector<32x128xi1>
    %131 = vector.broadcast %130 : vector<32x128xi1> to vector<32x128xi1>
    %132 = arith.xori %128, %131 : vector<32x128xi1>
    %133 = arith.andi %132, %126 : vector<32x128xi1>
    %134 = vector.broadcast %122 : i32 to vector<32x128xi32>
    %135 = arith.addi %124, %134 : vector<32x128xi32>
    %136 = arith.select %133, %135, %124 : vector<32x128xi1>, vector<32x128xi32>
    %c15_i32_57 = arith.constant 15 : i32
    %137 = vector.broadcast %c15_i32_57 : i32 to vector<32x128xi32>
    %138 = arith.cmpi eq, %136, %137 : vector<32x128xi32>
    %c31_i32_58 = arith.constant 31 : i32
    %139 = tpu.dynamic_rotate %119 by %c31_i32_58 dim 0 : vector<32x128xf32>, i32 -> vector<32x128xf32>
    %cst_59 = arith.constant 0.000000e+00 : f32
    %140 = vector.broadcast %cst_59 : f32 to vector<32x128xf32>
    %141 = arith.select %138, %140, %139 : vector<32x128xi1>, vector<32x128xf32>
    %142 = tpu.concatenate %118, %141 in 1 : vector<32x128xf32>, vector<32x128xf32> -> vector<32x256xf32>
    %c1_60 = arith.constant 1 : index
    %c0_61 = arith.constant 0 : index
    %c0_62 = arith.constant 0 : index
    %c0_63 = arith.constant 0 : index
    %143 = vector.load %arg3[%c1_60, %c0_61, %c0_62, %c0_63] : memref<2x2x256x256xbf16, #tpu.memory_space<vmem>>, vector<1x1x256x256xbf16>
    %144 = vector.shape_cast %143 : vector<1x1x256x256xbf16> to vector<256x256xbf16>
    %145 = arith.truncf %95 : vector<32x256xf32> to vector<32x256xbf16>
    %cst_64 = arith.constant dense<0.000000e+00> : vector<32x256xf32>
    %146 = tpu.matmul %145, %144, %cst_64 {dimension_numbers = #tpu.dot_dimension_numbers<[1], [0], [0], [1], [0, 0, 1, 1], [], []>} : vector<32x256xbf16>, vector<256x256xbf16>, vector<32x256xf32> -> vector<32x256xf32>
    %c1_65 = arith.constant 1 : index
    %c1_66 = arith.constant 1 : index
    %c0_67 = arith.constant 0 : index
    %c0_68 = arith.constant 0 : index
    %147 = vector.load %arg3[%c1_65, %c1_66, %c0_67, %c0_68] : memref<2x2x256x256xbf16, #tpu.memory_space<vmem>>, vector<1x1x256x256xbf16>
    %148 = vector.shape_cast %147 : vector<1x1x256x256xbf16> to vector<256x256xbf16>
    %149 = arith.truncf %142 : vector<32x256xf32> to vector<32x256xbf16>
    %cst_69 = arith.constant dense<0.000000e+00> : vector<32x256xf32>
    %150 = tpu.matmul %149, %148, %cst_69 {dimension_numbers = #tpu.dot_dimension_numbers<[1], [0], [0], [1], [0, 0, 1, 1], [], []>} : vector<32x256xbf16>, vector<256x256xbf16>, vector<32x256xf32> -> vector<32x256xf32>
    %151 = arith.addf %146, %150 : vector<32x256xf32>
    %152 = vector.broadcast %3 : vector<1x256xf32> to vector<32x256xf32>
    %153 = arith.mulf %151, %152 : vector<32x256xf32>
    %154 = vector.broadcast %4 : vector<1x256xf32> to vector<32x256xf32>
    %155 = arith.addf %153, %154 : vector<32x256xf32>
    %cst_70 = arith.constant 0.000000e+00 : f32
    %156 = vector.broadcast %cst_70 : f32 to vector<32x256xf32>
    %157 = arith.maximumf %155, %156 : vector<32x256xf32>
    %c0_71 = arith.constant 0 : index
    %c0_72 = arith.constant 0 : index
    %158 = vector.load %arg5[%c0_71, %c0_72] : memref<32x256xf32, #tpu.memory_space<vmem>>, vector<32x256xf32>
    tpu.vector_store %arg5[%c0_71, %c0_72], %157 {strides = array<i32>} : memref<32x256xf32, #tpu.memory_space<vmem>>, vector<32x256xf32>,
    return
  }
  func.func @transform_0(%arg0: i32) -> (i32, i32) {
    %c0_i32 = arith.constant 0 : i32
    %c0_i32_0 = arith.constant 0 : i32
    %c0_i32_1 = arith.constant 0 : i32
    return %c0_i32, %c0_i32_0 : i32, i32
  }
  func.func @transform_1(%arg0: i32) -> (i32, i32) {
    %c0_i32 = arith.constant 0 : i32
    %c0_i32_0 = arith.constant 0 : i32
    %c0_i32_1 = arith.constant 0 : i32
    return %c0_i32, %c0_i32_0 : i32, i32
  }
  func.func @transform_2(%arg0: i32) -> (i32, i32, i32, i32) {
    %c0_i32 = arith.constant 0 : i32
    %c0_i32_0 = arith.constant 0 : i32
    %c0_i32_1 = arith.constant 0 : i32
    %c0_i32_2 = arith.constant 0 : i32
    %c0_i32_3 = arith.constant 0 : i32
    return %c0_i32, %c0_i32_0, %c0_i32_1, %c0_i32_2 : i32, i32, i32, i32
  }
  func.func @transform_3(%arg0: i32) -> (i32, i32) {
    %c0_i32 = arith.constant 0 : i32
    %c0_i32_0 = arith.constant 0 : i32
    %c0_i32_1 = arith.constant 0 : i32
    return %c0_i32, %c0_i32_0 : i32, i32
  }
  func.func @transform_4(%arg0: i32) -> (i32, i32) {
    %c0_i32 = arith.constant 0 : i32
    %c0_i32_0 = arith.constant 0 : i32
    %c0_i32_1 = arith.constant 0 : i32
    return %c0_i32, %c0_i32_0 : i32, i32
  }
}

</mosaic_0001>

<bundles_post_ra>
// kernel: up_forward.1
= control target key start
LH: loop header
LB: loop body
LE: loop exit
PB: predicated region body
PF: predicated region fallthrough
CT: control target
= control target key end

     0   :  { %9 = vsyncpa [#allocation3], 0  ;;  %s2133_s15 = smov [#allocation2]   ;;  %s2862_s0 = inlined_call_operand.vmem [shape: f32[32,128], index: 0, kind: input, shape index: {}]   ;;  %s2863_s1 = inlined_call_operand.hbm [shape: bf16[256,256], index: 1, kind: input, shape index: {}]   ;;  %s2864_s2 = inlined_call_operand.vmem [shape: bf16[2,2,256,256], index: 2, kind: input, shape index: {}]   ;;  %s2865_s3 = inlined_call_operand.vmem [shape: f32[5,256], index: 3, kind: input, shape index: {}]   ;;  %s2866_s4 = inlined_call_operand.vmem [shape: f32[32,256], index: 4, kind: output, shape index: {}]  }
   0x1   :  { %s17_s16 = sshll.u32 %s2133_s15, 4  ;;  %s18_s16 = int_to_ptr.vmem [resolvable:$true] %s17_s16 }
   0x2   :  { %s2119_s17 = scalar_lea.vmem %s18_s16, 4096  ;;  %p2124_p1 = scmp.lt.s32.totalorder %s18_s16, %s18_s16 }
   0x3   :  { %p2120_p0 = scmp.ne.s32.totalorder %s18_s16, %s2119_s17  ;;  %p2125_p2 = scmp.lt.s32.totalorder %s2119_s17, %s2119_s17 }
   0x5   :  { %p2126_p3 = por %p2125_p2, %p2124_p1 }
   0x7   :  { %p2127_p4 = pnand %p2126_p3, %p2120_p0 }
   0x9   :  { %2130 = shalt.err (!%p2127_p4)
}
   0xa   :  { %s2134_s18 = smov 128   ;;  %s2135_s19 = smov 8  }
   0xb   :  { %23 = dma.hbm_to_vmem [thread:$0]  %s2863_s1, 4096, %s18_s16, [#allocation3], %s2134_s18, %s2134_s18, %s2135_s19  }
   0xc   :  { %2131 = dma.done.wait [#allocation3], 4096  }
   0xd   :  { %2132 = vsyncadd [#allocation3], 4294963200  ;;  %v1871_v0 = vld [vmem:[#allocation2 + $0x74] ss:$8 sps:$4 sm:$0xff]   ;;  %v1873_v1 = vld [vmem:[#allocation2 + $0x70] ss:$8 sps:$4 sm:$0xff]   ;;  %v44_v5 = vlaneseq }
   0xe   :  { %321 = vmatprep.subr.bf16.mxu0 %v1871_v0  ;;  %v1874_v2 = vld [vmem:[#allocation2 + $0x64] ss:$8 sps:$4 sm:$0xff]   ;;  %v1876_v3 = vld [vmem:[#allocation2 + $0x60] ss:$8 sps:$4 sm:$0xff]   ;;  %v1877_v4 = vld [vmem:[#allocation2 + $0x54] ss:$8 sps:$4 sm:$0xff]  }
   0xf   :  { %322 = vmatpush1.bf16.msra.mxu0 %v1873_v1  ;;  %v1879_v6 = vld [vmem:[#allocation2 + $0x50] ss:$8 sps:$4 sm:$0xff]   ;;  %v1880_v7 = vld [vmem:[#allocation2 + $0x44] ss:$8 sps:$4 sm:$0xff]   ;;  %v2165_v8 = vshrl.u32 %v44_v5, 7  ;;  %vm2136_vm2 = vmmov 1  }
  0x10   :  { %323 = vmatprep.subr.bf16.mxu0 %v1874_v2  ;;  %v1882_v9 = vld [vmem:[#allocation2 + $0x40] ss:$8 sps:$4 sm:$0xff]   ;;  %v1883_v10 = vld [vmem:[#allocation2 + $0x34] ss:$8 sps:$4 sm:$0xff]   ;;  %v1885_v12 = vld [vmem:[#allocation2 + $0x30] ss:$8 sps:$4 sm:$0xff]  }
  0x11   :  { %v46_v11 = vadd.s32 8, %v2165_v8  ;;  %v1886_v13 = vld [vmem:[#allocation2 + $0x24] ss:$8 sps:$4 sm:$0xff]   ;;  %v1888_v15 = vld [vmem:[#allocation2 + $0x20] ss:$8 sps:$4 sm:$0xff]   ;;  %vm105_vm0 = vcmp.lt.s32.totalorder %v2165_v8, 7 }
  0x12   :  { %v1889_v16 = vld [vmem:[#allocation2 + $0x14] ss:$8 sps:$4 sm:$0xff]   ;;  %v2171_v17 = vld [vmem:[%s2862_s0] sm:$0xff]  ;;  %v2176_v18 = vld [vmem:[%s2862_s0 + $0x8] sm:$0xff]  ;;  %v48_v50 = vadd.s32 24, %v2165_v8  ;;  %vm382_vm6 = vcmp.lt.s32.totalorder %v2165_v8, 1 }
  0x13   :  { %324 = vmatpush1.bf16.msra.mxu0 %v1876_v3  ;;  %v60_v14 = vand.u32 15, %v46_v11  ;;  %v2182_v19 = vld [vmem:[%s2862_s0 + $0x10] sm:$0xff]  ;;  %v101_v20 = vrot.slane %v2171_v17, 1  ;;  %v102_v21 = vrot.slane %v2176_v18, 1  ;;  %v1892_v24 = vld [vmem:[#allocation2 + $0x4] ss:$8 sps:$4 sm:$0xff]   ;;  %v146_v11 = vpack.c.bf16 %v2176_v18, %v2171_v17 }
  0x14   :  { %325 = vmatprep.subr.bf16.mxu0 %v1877_v4  ;;  %v1891_v22 = vld [vmem:[#allocation2 + $0x10] ss:$8 sps:$4 sm:$0xff]   ;;  %v103_v23 = vrot.slane %v2182_v19, 1  ;;  %v1894_v28 = vld [vmem:[#allocation2] ss:$8 sps:$4 sm:$0xff]   ;;  %v74_v55 = vand.u32 15, %v48_v50 }
  0x15   :  { %vm1831_vm1 = vcmp.ne.s32.totalorder %v60_v14, 15  ;;  %v108_v25 = vsel %vm105_vm0, %v101_v20, %v102_v21  ;;  %v1895_v30 = vld [vmem:[#allocation2 + $0xf4] ss:$8 sps:$4 sm:$0xff]   ;;  %v1930_v32 = vld [vmem:[%s2864_s2 + $0x170] ss:$8 sps:$4 sm:$0xff]  }
  0x16   :  { %v107_v26 = vsel %vm105_vm0, %v102_v21, %v103_v23  ;;  %vm2196_vm3 = vmpackc.low %vm1831_vm1, %vm2136_vm2  ;;  %v1928_v31 = vld [vmem:[%s2864_s2 + $0x174] ss:$8 sps:$4 sm:$0xff]   ;;  %v1897_v33 = vld [vmem:[#allocation2 + $0xf0] ss:$8 sps:$4 sm:$0xff]   ;;  %vm1832_vm4 = vcmp.ne.s32.totalorder %v74_v55, 15 }
  0x17   :  { %326 = vmatpush1.bf16.msra.mxu0 %v1879_v6  ;;  %v1569_v29 = vpack.c.bf16 %v107_v26, %v108_v25  ;;  %636 = vmatprep.subr.bf16.mxu1 %v1928_v31  ;;  %v1934_v34 = vld [vmem:[%s2864_s2 + $0x164] ss:$8 sps:$4 sm:$0xff]   ;;  %v1936_v35 = vld [vmem:[%s2864_s2 + $0x160] ss:$8 sps:$4 sm:$0xff]   ;;  %v1940_v37 = vld [vmem:[%s2864_s2 + $0x154] ss:$8 sps:$4 sm:$0xff]  }
  0x18   :  { %327 = vmatprep.subr.bf16.mxu0 %v1880_v7  ;;  %637 = vmatpush1.bf16.msra.mxu1 %v1930_v32  ;;  %v1898_v36 = vld [vmem:[#allocation2 + $0xe4] ss:$8 sps:$4 sm:$0xff]   ;;  %v1900_v38 = vld [vmem:[#allocation2 + $0xe0] ss:$8 sps:$4 sm:$0xff]   ;;  %v1942_v39 = vld [vmem:[%s2864_s2 + $0x150] ss:$8 sps:$4 sm:$0xff]  }
  0x19   :  { %1570 = vmatprep.mubr.msk.bf16.mxu0 %vm2196_vm3, %v1569_v29  ;;  %638 = vmatprep.subr.bf16.mxu1 %v1934_v34  ;;  %v1901_v40 = vld [vmem:[#allocation2 + $0xd4] ss:$8 sps:$4 sm:$0xff]   ;;  %v1946_v41 = vld [vmem:[%s2864_s2 + $0x144] ss:$8 sps:$4 sm:$0xff]   ;;  %v1903_v42 = vld [vmem:[#allocation2 + $0xd0] ss:$8 sps:$4 sm:$0xff]  }
  0x1a   :  { %v1948_v43 = vld [vmem:[%s2864_s2 + $0x140] ss:$8 sps:$4 sm:$0xff]   ;;  %v1904_v44 = vld [vmem:[#allocation2 + $0xc4] ss:$8 sps:$4 sm:$0xff]   ;;  %v1952_v45 = vld [vmem:[%s2864_s2 + $0x134] ss:$8 sps:$4 sm:$0xff]  }
  0x1b   :  { %328 = vmatpush1.bf16.msra.mxu0 %v1882_v9  ;;  %v1906_v46 = vld [vmem:[#allocation2 + $0xc0] ss:$8 sps:$4 sm:$0xff]   ;;  %v1954_v47 = vld [vmem:[%s2864_s2 + $0x130] ss:$8 sps:$4 sm:$0xff]   ;;  %v1907_v48 = vld [vmem:[#allocation2 + $0xb4] ss:$8 sps:$4 sm:$0xff]  }
  0x1c   :  { %329 = vmatprep.subr.bf16.mxu0 %v1883_v10  ;;  %639 = vmatpush1.bf16.msra.mxu1 %v1936_v35  ;;  %v1958_v49 = vld [vmem:[%s2864_s2 + $0x124] ss:$8 sps:$4 sm:$0xff]   ;;  %v1909_v51 = vld [vmem:[#allocation2 + $0xb0] ss:$8 sps:$4 sm:$0xff]   ;;  %v1960_v52 = vld [vmem:[%s2864_s2 + $0x120] ss:$8 sps:$4 sm:$0xff]  }
  0x1d   :  { %640 = vmatprep.subr.bf16.mxu1 %v1940_v37  ;;  %v1910_v53 = vld [vmem:[#allocation2 + $0xa4] ss:$8 sps:$4 sm:$0xff]   ;;  %v1964_v54 = vld [vmem:[%s2864_s2 + $0x114] ss:$8 sps:$4 sm:$0xff]   ;;  %v1912_v56 = vld [vmem:[#allocation2 + $0xa0] ss:$8 sps:$4 sm:$0xff]  }
  0x1e   :  { %v1966_v57 = vld [vmem:[%s2864_s2 + $0x110] ss:$8 sps:$4 sm:$0xff]   ;;  %v1913_v58 = vld [vmem:[#allocation2 + $0x94] ss:$8 sps:$4 sm:$0xff]   ;;  %v1970_v59 = vld [vmem:[%s2864_s2 + $0x104] ss:$8 sps:$4 sm:$0xff]  }
  0x1f   :  { %330 = vmatpush1.bf16.msra.mxu0 %v1885_v12  ;;  %v1915_v60 = vld [vmem:[#allocation2 + $0x90] ss:$8 sps:$4 sm:$0xff]   ;;  %v1916_v62 = vld [vmem:[#allocation2 + $0x84] ss:$8 sps:$4 sm:$0xff]   ;;  %v1972_v63 = vld [vmem:[%s2864_s2 + $0x100] ss:$8 sps:$4 sm:$0xff]  }
  0x20   :  { %331 = vmatprep.subr.bf16.mxu0 %v1886_v13  ;;  %641 = vmatpush1.bf16.msra.mxu1 %v1942_v39  ;;  %v43_v61 = vld [vmem:[%s2862_s0 + $0x18] sm:$0xff]  ;;  %vm2258_vm5 = vmpackc.low %vm1832_vm4, %vm2136_vm2  ;;  %v1918_v3 = vld [vmem:[#allocation2 + $0x80] ss:$8 sps:$4 sm:$0xff]  }
  0x21   :  { %642 = vmatprep.subr.bf16.mxu1 %v1946_v41  ;;  %v1976_v0 = vld [vmem:[%s2864_s2 + $0x1f4] ss:$8 sps:$4 sm:$0xff]   ;;  %v104_v1 = vrot.slane %v43_v61, 1  ;;  %v1978_v4 = vld [vmem:[%s2864_s2 + $0x1f0] ss:$8 sps:$4 sm:$0xff]   ;;  %v148_v21 = vpack.c.bf16 %v43_v61, %v2182_v19  ;;  %v2429_v61 = vsub.s32 1, %v2165_v8 }
  0x22   :  { %v1921_v5 = vld [vmem:[%s2864_s2 + $0x74] ss:$8 sps:$4 sm:$0xff]   ;;  %v1982_v6 = vld [vmem:[%s2864_s2 + $0x1e4] ss:$8 sps:$4 sm:$0xff]   ;;  %v1919_v10 = vld [vmem:[%s2864_s2 + $0x70] ss:$8 sps:$4 sm:$0xff]  }
  0x23   :  { %332 = vmatpush1.bf16.msra.mxu0 %v1888_v15  ;;  %v106_v7 = vsel %vm105_vm0, %v103_v23, %v104_v1  ;;  %v109_v9 = vsel %vm105_vm0, %v104_v1, %v101_v20  ;;  %v1924_v12 = vld [vmem:[%s2864_s2 + $0x64] ss:$8 sps:$4 sm:$0xff]   ;;  %v1984_v13 = vld [vmem:[%s2864_s2 + $0x1e0] ss:$8 sps:$4 sm:$0xff]   ;;  %v1988_v15 = vld [vmem:[%s2864_s2 + $0x1d4] ss:$8 sps:$4 sm:$0xff]  }
  0x24   :  { %333 = vmatprep.subr.bf16.mxu0 %v1889_v16  ;;  %643 = vmatpush1.bf16.msra.mxu1 %v1948_v43  ;;  %v1573_v14 = vpack.c.bf16 %v109_v9, %v106_v7  ;;  %v1922_v16 = vld [vmem:[%s2864_s2 + $0x60] ss:$8 sps:$4 sm:$0xff]   ;;  %v1927_v17 = vld [vmem:[%s2864_s2 + $0x54] ss:$8 sps:$4 sm:$0xff]   ;;  %v1990_v18 = vld [vmem:[%s2864_s2 + $0x1d0] ss:$8 sps:$4 sm:$0xff]  }
  0x25   :  { %644 = vmatprep.subr.bf16.mxu1 %v1952_v45  ;;  %v1925_v20 = vld [vmem:[%s2864_s2 + $0x50] ss:$8 sps:$4 sm:$0xff]   ;;  %v1931_v23 = vld [vmem:[%s2864_s2 + $0x40] ss:$8 sps:$4 sm:$0xff]   ;;  %v1945_v25 = vld [vmem:[%s2864_s2 + $0x24] ss:$8 sps:$4 sm:$0xff]  }
  0x26   :  { %v1937_v19 = vld [vmem:[%s2864_s2 + $0x30] ss:$8 sps:$4 sm:$0xff]   ;;  %v1943_v26 = vld [vmem:[%s2864_s2 + $0x20] ss:$8 sps:$4 sm:$0xff]   ;;  %v1963_v32 = vld [vmem:[%s2864_s2 + $0xf4] ss:$8 sps:$4 sm:$0xff]  }
  0x27   :  { %334 = vmatpush1.bf16.msra.mxu0 %v1891_v22  ;;  %v1933_v22 = vld [vmem:[%s2864_s2 + $0x44] ss:$8 sps:$4 sm:$0xff]   ;;  %v1949_v29 = vld [vmem:[%s2864_s2 + $0x10] ss:$8 sps:$4 sm:$0xff]   ;;  %v1955_v31 = vld [vmem:[%s2864_s2] ss:$8 sps:$4 sm:$0xff]  }
  0x28   :  { %335 = vmatprep.subr.bf16.mxu0 %v1892_v24  ;;  %645 = vmatpush1.bf16.msra.mxu1 %v1954_v47  ;;  %v1939_v24 = vld [vmem:[%s2864_s2 + $0x34] ss:$8 sps:$4 sm:$0xff]   ;;  %v1969_v34 = vld [vmem:[%s2864_s2 + $0xe4] ss:$8 sps:$4 sm:$0xff]   ;;  %v1967_v35 = vld [vmem:[%s2864_s2 + $0xe0] ss:$8 sps:$4 sm:$0xff]  }
  0x29   :  { %646 = vmatprep.subr.bf16.mxu1 %v1958_v49  ;;  %v1973_v37 = vld [vmem:[%s2864_s2 + $0xd0] ss:$8 sps:$4 sm:$0xff]   ;;  %v1979_v39 = vld [vmem:[%s2864_s2 + $0xc0] ss:$8 sps:$4 sm:$0xff]   ;;  %v2005_v50 = vld [vmem:[%s2864_s2 + $0x84] ss:$8 sps:$4 sm:$0xff]  }
  0x2a   :  { %v1985_v41 = vld [vmem:[%s2864_s2 + $0xb0] ss:$8 sps:$4 sm:$0xff]   ;;  %v1991_v43 = vld [vmem:[%s2864_s2 + $0xa0] ss:$8 sps:$4 sm:$0xff]   ;;  %2880 = vst [vmem:[#allocation6_spill] sm:$0xff] %v2429_v61 }
  0x2b   :  { %336 = vmatpush1.bf16.msra.mxu0 %v1894_v28  ;;  %v1951_v28 = vld [vmem:[%s2864_s2 + $0x14] ss:$8 sps:$4 sm:$0xff]   ;;  %v1996_v45 = vld [vmem:[%s2864_s2 + $0x1c0] ss:$8 sps:$4 sm:$0xff]   ;;  %v1997_v47 = vld [vmem:[%s2864_s2 + $0x90] ss:$8 sps:$4 sm:$0xff]  }
  0x2c   :  { %337 = vmatprep.subr.bf16.mxu0 %v1895_v30  ;;  %647 = vmatpush1.bf16.msra.mxu1 %v1960_v52  ;;  %v1957_v30 = vld [vmem:[%s2864_s2 + $0x4] ss:$8 sps:$4 sm:$0xff]   ;;  %v2002_v49 = vld [vmem:[%s2864_s2 + $0x1b0] ss:$8 sps:$4 sm:$0xff]  }
  0x2d   :  { %648 = vmatprep.subr.bf16.mxu1 %v1964_v54  ;;  %v2006_v52 = vld [vmem:[%s2864_s2 + $0x1a4] ss:$8 sps:$4 sm:$0xff]   ;;  %v2009_v54 = vld [vmem:[%s2864_s2 + $0x194] ss:$8 sps:$4 sm:$0xff]   ;;  %v2011_v55 = vld [vmem:[%s2864_s2 + $0x190] ss:$8 sps:$4 sm:$0xff]  }
  0x2f   :  { %338 = vmatpush2.bf16.msra.mxu0 %v1897_v33  ;;  %v1961_v33 = vld [vmem:[%s2864_s2 + $0xf0] ss:$8 sps:$4 sm:$0xff]  }
  0x30   :  { %339 = vmatprep.subr.bf16.mxu0 %v1898_v36  ;;  %649 = vmatpush1.bf16.msra.mxu1 %v1966_v57  ;;  %v1975_v36 = vld [vmem:[%s2864_s2 + $0xd4] ss:$8 sps:$4 sm:$0xff]   ;;  %v2014_v57 = vld [vmem:[%s2864_s2 + $0x180] ss:$8 sps:$4 sm:$0xff]  }
  0x31   :  { %650 = vmatprep.subr.bf16.mxu1 %v1970_v59  ;;  %v2026_v59 = vld [vmem:[%s2864_s2 + $0x374] ss:$8 sps:$4 sm:$0xff]  }
  0x33   :  { %340 = vmatpush2.bf16.msra.mxu0 %v1900_v38  ;;  %v1981_v38 = vld [vmem:[%s2864_s2 + $0xc4] ss:$8 sps:$4 sm:$0xff]  }
  0x34   :  { %341 = vmatprep.subr.bf16.mxu0 %v1901_v40  ;;  %651 = vmatpush1.bf16.msra.mxu1 %v1972_v63  ;;  %v1987_v40 = vld [vmem:[%s2864_s2 + $0xb4] ss:$8 sps:$4 sm:$0xff]  }
  0x35   :  { %652 = vmatprep.subr.bf16.mxu1 %v1976_v0 }
  0x37   :  { %342 = vmatpush2.bf16.msra.mxu0 %v1903_v42  ;;  %v1993_v42 = vld [vmem:[%s2864_s2 + $0xa4] ss:$8 sps:$4 sm:$0xff]  }
  0x38   :  { %343 = vmatprep.subr.bf16.mxu0 %v1904_v44  ;;  %653 = vmatpush2.bf16.msra.mxu1 %v1978_v4  ;;  %v1994_v44 = vld [vmem:[%s2864_s2 + $0x1c4] ss:$8 sps:$4 sm:$0xff]  }
  0x39   :  { %654 = vmatprep.subr.bf16.mxu1 %v1982_v6 }
  0x3b   :  { %344 = vmatpush2.bf16.msra.mxu0 %v1906_v46  ;;  %v1999_v46 = vld [vmem:[%s2864_s2 + $0x94] ss:$8 sps:$4 sm:$0xff]  }
  0x3c   :  { %345 = vmatprep.subr.bf16.mxu0 %v1907_v48  ;;  %655 = vmatpush2.bf16.msra.mxu1 %v1984_v13  ;;  %v2000_v48 = vld [vmem:[%s2864_s2 + $0x1b4] ss:$8 sps:$4 sm:$0xff]  }
  0x3d   :  { %656 = vmatprep.subr.bf16.mxu1 %v1988_v15  ;;  %v2442_v15 = vld [vmem:[%s2864_s2 + $0x270] ss:$8 sps:$4 sm:$0xff]  }
  0x3f   :  { %346 = vmatpush2.bf16.msra.mxu0 %v1909_v51  ;;  %v2003_v51 = vld [vmem:[%s2864_s2 + $0x80] ss:$8 sps:$4 sm:$0xff]  }
  0x40   :  { %347 = vmatprep.subr.bf16.mxu0 %v1910_v53  ;;  %657 = vmatpush2.bf16.msra.mxu1 %v1990_v18  ;;  %v2008_v53 = vld [vmem:[%s2864_s2 + $0x1a0] ss:$8 sps:$4 sm:$0xff]   ;;  %v2447_v18 = vld [vmem:[%s2864_s2 + $0x264] ss:$8 sps:$4 sm:$0xff]  }
  0x41   :  { %658 = vmatprep.subr.bf16.mxu1 %v1994_v44  ;;  %v2489_v44 = vld [vmem:[%s2864_s2 + $0x244] ss:$8 sps:$4 sm:$0xff]  }
  0x43   :  { %348 = vmatpush2.bf16.msra.mxu0 %v1912_v56  ;;  %v2012_v56 = vld [vmem:[%s2864_s2 + $0x184] ss:$8 sps:$4 sm:$0xff]  }
  0x44   :  { %349 = vmatprep.subr.bf16.mxu0 %v1913_v58  ;;  %659 = vmatpush2.bf16.msra.mxu1 %v1996_v45  ;;  %v2419_v58 = vld [vmem:[%s2864_s2 + $0x274] ss:$8 sps:$4 sm:$0xff]  }
  0x45   :  { %660 = vmatprep.subr.bf16.mxu1 %v2000_v48  ;;  %v2024_v48 = vld [vmem:[%s2864_s2 + $0x370] ss:$8 sps:$4 sm:$0xff]  }
  0x47   :  { %350 = vmatpush2.bf16.msra.mxu0 %v1915_v60  ;;  %v2426_v60 = vsub.s32 0, %v2165_v8 }
  0x48   :  { %351 = vmatprep.subr.bf16.mxu0 %v1916_v62  ;;  %661 = vmatpush2.bf16.msra.mxu1 %v2002_v49  ;;  %v31_v62 = vld [vmem:[%s2865_s3] ss:$8 sm:$0x3] }
  0x49   :  { %662 = vmatprep.subr.bf16.mxu1 %v2006_v52  ;;  %2879 = vst [vmem:[#allocation5_spill] sm:$0xff] %v2426_v60  ;;  %v154_v1 = vrot.slane %v31_v62, %v2426_v60 }
  0x4b   :  { %352 = vmatpush2.bf16.msra.mxu0 %v1918_v3  ;;  %v158_v3 = vrot.slane %v31_v62, %v2429_v61  ;;  %v2536_v62 = vld [vmem:[%s2864_s2 + $0x230] ss:$8 sps:$4 sm:$0xff]  }
  0x4c   :  { %849 = vmatprep.subr.bf16.mxu0 %v1921_v5  ;;  %663 = vmatpush2.bf16.msra.mxu1 %v2008_v53  ;;  %v2512_v53 = vld [vmem:[%s2864_s2 + $0x240] ss:$8 sps:$4 sm:$0xff]  }
  0x4d   :  { %664 = vmatprep.subr.bf16.mxu1 %v2009_v54  ;;  %v2520_v54 = vld [vmem:[%s2864_s2 + $0x234] ss:$8 sps:$4 sm:$0xff]  }
  0x4e   :  { %354 = vmatmul.mubr.bf16.vlgmr.msra.gmra.mxu0 %v146_v11 }
  0x4f   :  { %1574 = vmatprep.mubr.msk.bf16.mxu0 %vm2258_vm5, %v1573_v14  ;;  %850 = vmatpush1.bf16.msra.mxu0 %v1919_v10 }
  0x50   :  { %851 = vmatprep.subr.bf16.mxu0 %v1924_v12  ;;  %665 = vmatpush2.bf16.msra.mxu1 %v2011_v55 }
  0x51   :  { %666 = vmatprep.subr.bf16.mxu1 %v2012_v56  ;;  %v2030_v56 = vld [vmem:[%s2864_s2 + $0x360] ss:$8 sps:$4 sm:$0xff]  }
  0x53   :  { %852 = vmatpush1.bf16.msra.mxu0 %v1922_v16 }
  0x54   :  { %853 = vmatprep.subr.bf16.mxu0 %v1927_v17  ;;  %667 = vmatpush2.bf16.msra.mxu1 %v2014_v57  ;;  %v2038_v57 = vld [vmem:[%s2864_s2 + $0x354] ss:$8 sps:$4 sm:$0xff]  }
  0x55   :  { %1206 = vmatprep.subr.bf16.mxu1 %v2026_v59 }
  0x56   :  { %364 = vmatmul.mubr.bf16.gmra.mxu0 %v148_v21 }
  0x57   :  { %854 = vmatpush1.bf16.msra.mxu0 %v1925_v20 }
  0x58   :  { %855 = vmatprep.subr.bf16.mxu0 %v1933_v22 }
  0x5b   :  { %856 = vmatpush1.bf16.msra.mxu0 %v1931_v23  ;;  %v53_v23 = vand.u32 15, %v2165_v8 }
  0x5c   :  { %857 = vmatprep.subr.bf16.mxu0 %v1939_v24 }
  0x5d   :  { %vm2470_vm7 = vcmp.ne.s32.totalorder %v53_v23, 0  ;;  %v2060_v23 = vld [vmem:[%s2864_s2 + $0x310] ss:$8 sps:$4 sm:$0xff]  }
  0x5e   :  { %vm2498_vm8 = vmpackc.low %vm2136_vm2, %vm2470_vm7 }
  0x5f   :  { %858 = vmatpush1.bf16.msra.mxu0 %v1937_v19 }
  0x60   :  { %859 = vmatprep.subr.bf16.mxu0 %v1945_v25 }
  0x63   :  { %860 = vmatpush1.bf16.msra.mxu0 %v1943_v26  ;;  %v2458_v26 = vld [vmem:[%s2864_s2 + $0x260] ss:$8 sps:$4 sm:$0xff]  }
  0x64   :  { %861 = vmatprep.subr.bf16.mxu0 %v1951_v28 }
  0x67   :  { %862 = vmatpush1.bf16.msra.mxu0 %v1949_v29 }
  0x68   :  { %863 = vmatprep.subr.bf16.mxu0 %v1957_v30  ;;  %v2464_v30 = vld [vmem:[%s2864_s2 + $0x254] ss:$8 sps:$4 sm:$0xff]  }
  0x6b   :  { %864 = vmatpush1.bf16.msra.mxu0 %v1955_v31 }
  0x6c   :  { %865 = vmatprep.subr.bf16.mxu0 %v1963_v32 }
  0x6f   :  { %866 = vmatpush2.bf16.msra.mxu0 %v1961_v33 }
  0x70   :  { %867 = vmatprep.subr.bf16.mxu0 %v1969_v34 }
  0x73   :  { %868 = vmatpush2.bf16.msra.mxu0 %v1967_v35  ;;  %v2668_v35 = vld [vmem:[%s2864_s2 + $0x2c0] ss:$8 sps:$4 sm:$0xff]  }
  0x74   :  { %869 = vmatprep.subr.bf16.mxu0 %v1975_v36  ;;  %v47_v36 = vadd.s32 16, %v2165_v8 }
  0x77   :  { %870 = vmatpush2.bf16.msra.mxu0 %v1973_v37 }
  0x78   :  { %871 = vmatprep.subr.bf16.mxu0 %v1981_v38 }
  0x7b   :  { %872 = vmatpush2.bf16.msra.mxu0 %v1979_v39 }
  0x7c   :  { %873 = vmatprep.subr.bf16.mxu0 %v1987_v40  ;;  %v2479_v40 = vld [vmem:[%s2864_s2 + $0x250] ss:$8 sps:$4 sm:$0xff]  }
  0x7f   :  { %874 = vmatpush2.bf16.msra.mxu0 %v1985_v41 }
  0x80   :  { %875 = vmatprep.subr.bf16.mxu0 %v1993_v42 }
  0x83   :  { %876 = vmatpush2.bf16.msra.mxu0 %v1991_v43 }
  0x84   :  { %877 = vmatprep.subr.bf16.mxu0 %v1999_v46 }
  0x87   :  { %878 = vmatpush2.bf16.msra.mxu0 %v1997_v47 }
  0x88   :  { %879 = vmatprep.subr.bf16.mxu0 %v2005_v50  ;;  %v67_v50 = vand.u32 15, %v47_v36  ;;  %v2080_v36 = vld [vmem:[%s2864_s2 + $0x3e4] ss:$8 sps:$4 sm:$0xff]  }
  0x8a   :  { %vm1834_vm9 = vcmp.ne.s32.totalorder %v67_v50, 0  ;;  %v2722_v50 = vld [vmem:[%s2864_s2 + $0x290] ss:$8 sps:$4 sm:$0xff]  }
  0x8b   :  { %880 = vmatpush2.bf16.msra.mxu0 %v2003_v51  ;;  %v2032_v51 = vld [vmem:[%s2864_s2 + $0x364] ss:$8 sps:$4 sm:$0xff]   ;;  %vm2547_vm10 = vmpackc.low %vm2136_vm2, %vm1834_vm9  ;;  %2888 = vst [vmem:[#allocation8_spill] sm:$0xff] %v2722_v50 }
  0x8c   :  { %1419 = vmatprep.subr.bf16.mxu0 %v2419_v58 }
  0x92   :  { %v2892_v2 = vld [vmem:[#allocation8_spill] sm:$0xff] }
 0x10e   :  { %v355_v63 = vpop.f32.mrf.mxu0 }
 0x10f   :  { %v356_v7 = vadd.f32 %v355_v63, %v154_v1  ;;  %v2542_v63 = vld [vmem:[%s2864_s2 + $0x224] ss:$8 sps:$4 sm:$0xff]  }
 0x110   :  { %v357_v0 = vpop.f32.mrf.mxu0 }
 0x111   :  { %v358_v9 = vadd.f32 %v357_v0, %v158_v3  ;;  %v391_v20 = vrot.slane %v356_v7, 1 }
 0x112   :  { %v359_v4 = vpop.f32.mrf.mxu0 }
 0x113   :  { %v360_v5 = vadd.f32 %v359_v4, %v154_v1  ;;  %v378_v37 = vrot.slane %v358_v9, 7 }
 0x114   :  { %v361_v6 = vpop.f32.mrf.mxu0 }
 0x115   :  { %v2436_v10 = vadd.f32 %v361_v6, %v158_v3  ;;  %v392_v12 = vrot.slane %v360_v5, 1  ;;  %v435_v16 = vpack.c.bf16 %v360_v5, %v356_v7  ;;  %v2044_v5 = vld [vmem:[%s2864_s2 + $0x344] ss:$8 sps:$4 sm:$0xff]   ;;  %v2561_v6 = vld [vmem:[%s2864_s2 + $0x220] ss:$8 sps:$4 sm:$0xff]  }
 0x116   :  { %v365_v11 = vpop.f32.mrf.mxu0  ;;  %v2569_v7 = vld [vmem:[%s2864_s2 + $0x214] ss:$8 sps:$4 sm:$0xff]  }
 0x117   :  { %v436_v13 = vpack.c.bf16 %v2436_v10, %v358_v9  ;;  %v366_v14 = vadd.f32 %v365_v11, %v154_v1  ;;  %v397_v25 = vsel %vm105_vm0, %v391_v20, %v392_v12  ;;  %v379_v31 = vrot.slane %v2436_v10, 7  ;;  %v2042_v9 = vld [vmem:[%s2864_s2 + $0x340] ss:$8 sps:$4 sm:$0xff]   ;;  %v2050_v10 = vld [vmem:[%s2864_s2 + $0x334] ss:$8 sps:$4 sm:$0xff]  }
 0x118   :  { %v367_v17 = vpop.f32.mrf.mxu0  ;;  %v2581_v11 = vld [vmem:[%s2864_s2 + $0x210] ss:$8 sps:$4 sm:$0xff]  }
 0x119   :  { %v393_v21 = vrot.slane %v366_v14, 1  ;;  %881 = vmatprep.mubr.bf16.mxu0 %v436_v13  ;;  %v368_v32 = vadd.f32 %v367_v17, %v158_v3  ;;  %v385_v45 = vsel %vm382_vm6, %v378_v37, %v379_v31  ;;  %v2048_v13 = vld [vmem:[%s2864_s2 + $0x330] ss:$8 sps:$4 sm:$0xff]   ;;  %v2605_v17 = vld [vmem:[%s2864_s2 + $0x2f4] ss:$8 sps:$4 sm:$0xff]  }
 0x11a   :  { %v369_v22 = vpop.f32.mrf.mxu0  ;;  %882 = vmatmul.mubr.bf16.vlgmr.msra.gmra.mxu0 %v435_v16  ;;  %v2599_v16 = vld [vmem:[%s2864_s2 + $0x200] ss:$8 sps:$4 sm:$0xff]  }
 0x11b   :  { %v370_v24 = vadd.f32 %v369_v22, %v154_v1  ;;  %v396_v19 = vsel %vm105_vm0, %v392_v12, %v393_v21  ;;  %1420 = vmatpush1.bf16.msra.mxu0 %v2442_v15  ;;  %v380_v55 = vrot.slane %v368_v32, 7  ;;  %v2587_v12 = vld [vmem:[%s2864_s2 + $0x204] ss:$8 sps:$4 sm:$0xff]   ;;  %v2617_v22 = vld [vmem:[%s2864_s2 + $0x2f0] ss:$8 sps:$4 sm:$0xff]  }
 0x11c   :  { %v371_v28 = vpop.f32.mrf.mxu0  ;;  %v1641_v29 = vpack.c.bf16 %v396_v19, %v397_v25  ;;  %1421 = vmatprep.subr.bf16.mxu0 %v2447_v18  ;;  %v2632_v19 = vld [vmem:[%s2864_s2 + $0x2e0] ss:$8 sps:$4 sm:$0xff]   ;;  %v2068_v25 = vld [vmem:[%s2864_s2 + $0x304] ss:$8 sps:$4 sm:$0xff]  }
 0x11d   :  { %v394_v33 = vrot.slane %v370_v24, 1  ;;  %v372_v34 = vadd.f32 %v371_v28, %v158_v3  ;;  %v437_v43 = vpack.c.bf16 %v370_v24, %v366_v14  ;;  %v384_v0 = vsel %vm382_vm6, %v379_v31, %v380_v55  ;;  %v2036_v3 = vld [vmem:[%s2864_s2 + $0x350] ss:$8 sps:$4 sm:$0xff]   ;;  %v2056_v14 = vld [vmem:[%s2864_s2 + $0x324] ss:$8 sps:$4 sm:$0xff]  }
 0x11e   :  { %1642 = vmatprep.mubr.msk.bf16.mxu1 %vm2196_vm3, %v1641_v29  ;;  %v2627_v24 = vld [vmem:[%s2864_s2 + $0x2e4] ss:$8 sps:$4 sm:$0xff]   ;;  %v2066_v28 = vld [vmem:[%s2864_s2 + $0x300] ss:$8 sps:$4 sm:$0xff]   ;;  %v2645_v29 = vld [vmem:[%s2864_s2 + $0x2d4] ss:$8 sps:$4 sm:$0xff]  }
 0x11f   :  { %v381_v38 = vrot.slane %v372_v34, 7  ;;  %v438_v39 = vpack.c.bf16 %v372_v34, %v368_v32  ;;  %1422 = vmatpush1.bf16.msra.mxu0 %v2458_v26  ;;  %v395_v41 = vsel %vm105_vm0, %v393_v21, %v394_v33  ;;  %v398_v42 = vsel %vm105_vm0, %v394_v33, %v391_v20  ;;  %v2054_v20 = vld [vmem:[%s2864_s2 + $0x320] ss:$8 sps:$4 sm:$0xff]   ;;  %v2062_v21 = vld [vmem:[%s2864_s2 + $0x314] ss:$8 sps:$4 sm:$0xff]  }
 0x120   :  { %1423 = vmatprep.subr.bf16.mxu0 %v2464_v30  ;;  %v1649_v52 = vpack.c.bf16 %v398_v42, %v395_v41  ;;  %v2650_v31 = vld [vmem:[%s2864_s2 + $0x2d0] ss:$8 sps:$4 sm:$0xff]   ;;  %v2074_v32 = vld [vmem:[%s2864_s2 + $0x3f4] ss:$8 sps:$4 sm:$0xff]   ;;  %v2663_v34 = vld [vmem:[%s2864_s2 + $0x2c4] ss:$8 sps:$4 sm:$0xff]  }
 0x121   :  { %v386_v46 = vsel %vm382_vm6, %v381_v38, %v378_v37  ;;  %891 = vmatprep.mubr.bf16.mxu0 %v438_v39  ;;  %v383_v59 = vsel %vm382_vm6, %v380_v55, %v381_v38  ;;  %v2072_v33 = vld [vmem:[%s2864_s2 + $0x3f0] ss:$8 sps:$4 sm:$0xff]   ;;  %v2078_v37 = vld [vmem:[%s2864_s2 + $0x3e0] ss:$8 sps:$4 sm:$0xff]   ;;  %v2681_v38 = vld [vmem:[%s2864_s2 + $0x2b4] ss:$8 sps:$4 sm:$0xff]  }
 0x122   :  { %892 = vmatmul.mubr.bf16.gmra.mxu0 %v437_v43  ;;  %v1645_v49 = vpack.c.bf16 %v385_v45, %v386_v46  ;;  %v1653_v4 = vpack.c.bf16 %v383_v59, %v384_v0  ;;  %v2686_v39 = vld [vmem:[%s2864_s2 + $0x2b0] ss:$8 sps:$4 sm:$0xff]   ;;  %v2086_v41 = vld [vmem:[%s2864_s2 + $0x3d4] ss:$8 sps:$4 sm:$0xff]   ;;  %v2699_v43 = vld [vmem:[%s2864_s2 + $0x2a4] ss:$8 sps:$4 sm:$0xff]  }
 0x123   :  { %1424 = vmatpush1.bf16.msra.mxu0 %v2479_v40  ;;  %v2084_v42 = vld [vmem:[%s2864_s2 + $0x3d0] ss:$8 sps:$4 sm:$0xff]   ;;  %v2704_v45 = vld [vmem:[%s2864_s2 + $0x2a0] ss:$8 sps:$4 sm:$0xff]   ;;  %v2092_v46 = vld [vmem:[%s2864_s2 + $0x3c4] ss:$8 sps:$4 sm:$0xff]  }
 0x124   :  { %1646 = vmatmul.mubr.msk.bf16.vlgmr.msra.gmra.mxu1 %vm2498_vm8, %v1645_v49  ;;  %1425 = vmatprep.subr.bf16.mxu0 %v2489_v44  ;;  %v2717_v49 = vld [vmem:[%s2864_s2 + $0x294] ss:$8 sps:$4 sm:$0xff]   ;;  %v2735_v55 = vld [vmem:[%s2864_s2 + $0x284] ss:$8 sps:$4 sm:$0xff]   ;;  %v2102_v59 = vld [vmem:[%s2864_s2 + $0x3a0] ss:$8 sps:$4 sm:$0xff]  }
 0x125   :  { %1650 = vmatprep.mubr.msk.bf16.mxu1 %vm2258_vm5, %v1649_v52  ;;  %1207 = vmatpush1.bf16.msra.mxu1 %v2024_v48  ;;  %v2090_v48 = vld [vmem:[%s2864_s2 + $0x3c0] ss:$8 sps:$4 sm:$0xff]   ;;  %2887 = vst [vmem:[#allocation7_spill] sm:$0xff] %v2717_v49  ;;  %v2096_v52 = vld [vmem:[%s2864_s2 + $0x3b0] ss:$8 sps:$4 sm:$0xff]   ;;  %2889 = vst [vmem:[#allocation9_spill] sm:$0xff] %v2735_v55 }
 0x126   :  { %1208 = vmatprep.subr.bf16.mxu1 %v2032_v51  ;;  %v2098_v51 = vld [vmem:[%s2864_s2 + $0x3b4] ss:$8 sps:$4 sm:$0xff]  }
 0x127   :  { %1426 = vmatpush1.bf16.msra.mxu0 %v2512_v53  ;;  %v2107_v0 = vld [vmem:[%s2864_s2 + $0x394] ss:$8 sps:$4 sm:$0xff]  }
 0x128   :  { %1427 = vmatprep.subr.bf16.mxu0 %v2520_v54 }
 0x129   :  { %1209 = vmatpush1.bf16.msra.mxu1 %v2030_v56  ;;  %v2740_v56 = vld [vmem:[%s2864_s2 + $0x280] ss:$8 sps:$4 sm:$0xff]  }
 0x12a   :  { %1210 = vmatprep.subr.bf16.mxu1 %v2038_v57  ;;  %2890 = vst [vmem:[#allocation10_spill] sm:$0xff] %v2740_v56  ;;  %v2104_v57 = vld [vmem:[%s2864_s2 + $0x3a4] ss:$8 sps:$4 sm:$0xff]  }
 0x12b   :  { %1428 = vmatpush1.bf16.msra.mxu0 %v2536_v62 }
 0x12c   :  { %1654 = vmatmul.mubr.msk.bf16.gmra.mxu1 %vm2547_vm10, %v1653_v4  ;;  %1429 = vmatprep.subr.bf16.mxu0 %v2542_v63  ;;  %v2110_v4 = vld [vmem:[%s2864_s2 + $0x384] ss:$8 sps:$4 sm:$0xff]   ;;  %v2891_v8 = vld [vmem:[#allocation7_spill] sm:$0xff] }
 0x12d   :  { %1211 = vmatpush1.bf16.msra.mxu1 %v2036_v3  ;;  %v2105_v3 = vld [vmem:[%s2864_s2 + $0x390] ss:$8 sps:$4 sm:$0xff]  }
 0x12e   :  { %1212 = vmatprep.subr.bf16.mxu1 %v2044_v5  ;;  %v2108_v5 = vld [vmem:[%s2864_s2 + $0x380] ss:$8 sps:$4 sm:$0xff]  }
 0x12f   :  { %1430 = vmatpush1.bf16.msra.mxu0 %v2561_v6 }
 0x130   :  { %1431 = vmatprep.subr.bf16.mxu0 %v2569_v7 }
 0x131   :  { %1213 = vmatpush1.bf16.msra.mxu1 %v2042_v9 }
 0x132   :  { %1214 = vmatprep.subr.bf16.mxu1 %v2050_v10 }
 0x133   :  { %1432 = vmatpush1.bf16.msra.mxu0 %v2581_v11 }
 0x134   :  { %1433 = vmatprep.subr.bf16.mxu0 %v2587_v12 }
 0x135   :  { %1215 = vmatpush1.bf16.msra.mxu1 %v2048_v13 }
 0x136   :  { %1216 = vmatprep.subr.bf16.mxu1 %v2056_v14 }
 0x137   :  { %1434 = vmatpush1.bf16.msra.mxu0 %v2599_v16 }
 0x138   :  { %1435 = vmatprep.subr.bf16.mxu0 %v2605_v17 }
 0x139   :  { %1217 = vmatpush1.bf16.msra.mxu1 %v2054_v20  ;;  %v1531_v20 = vld [vmem:[%s2865_s3 + $0x1] ss:$8 sm:$0x3] }
 0x13a   :  { %1218 = vmatprep.subr.bf16.mxu1 %v2062_v21 }
 0x13b   :  { %1436 = vmatpush2.bf16.msra.mxu0 %v2617_v22 }
 0x13c   :  { %1437 = vmatprep.subr.bf16.mxu0 %v2627_v24 }
 0x13d   :  { %1219 = vmatpush1.bf16.msra.mxu1 %v2060_v23  ;;  %v910_v23 = vrot.slane %v1531_v20, %v2429_v61 }
 0x13e   :  { %1220 = vmatprep.subr.bf16.mxu1 %v2068_v25 }
 0x13f   :  { %1438 = vmatpush2.bf16.msra.mxu0 %v2632_v19 }
 0x140   :  { %1439 = vmatprep.subr.bf16.mxu0 %v2645_v29 }
 0x141   :  { %1221 = vmatpush1.bf16.msra.mxu1 %v2066_v28 }
 0x142   :  { %1222 = vmatprep.subr.bf16.mxu1 %v2074_v32  ;;  %v906_v32 = vrot.slane %v1531_v20, %v2426_v60 }
 0x143   :  { %1440 = vmatpush2.bf16.msra.mxu0 %v2650_v31 }
 0x144   :  { %1441 = vmatprep.subr.bf16.mxu0 %v2663_v34 }
 0x145   :  { %1223 = vmatpush2.bf16.msra.mxu1 %v2072_v33 }
 0x146   :  { %1224 = vmatprep.subr.bf16.mxu1 %v2080_v36 }
 0x147   :  { %1442 = vmatpush2.bf16.msra.mxu0 %v2668_v35 }
 0x148   :  { %1443 = vmatprep.subr.bf16.mxu0 %v2681_v38 }
 0x149   :  { %1225 = vmatpush2.bf16.msra.mxu1 %v2078_v37 }
 0x14a   :  { %1226 = vmatprep.subr.bf16.mxu1 %v2086_v41 }
 0x14b   :  { %1444 = vmatpush2.bf16.msra.mxu0 %v2686_v39 }
 0x14c   :  { %1445 = vmatprep.subr.bf16.mxu0 %v2699_v43 }
 0x14d   :  { %1227 = vmatpush2.bf16.msra.mxu1 %v2084_v42 }
 0x14e   :  { %1228 = vmatprep.subr.bf16.mxu1 %v2092_v46 }
 0x14f   :  { %1446 = vmatpush2.bf16.msra.mxu0 %v2704_v45 }
 0x150   :  { %1447 = vmatprep.subr.bf16.mxu0 %v2717_v49 }
 0x151   :  { %1229 = vmatpush2.bf16.msra.mxu1 %v2090_v48 }
 0x152   :  { %1230 = vmatprep.subr.bf16.mxu1 %v2098_v51 }
 0x153   :  { %1448 = vmatpush2.bf16.msra.mxu0 %v2722_v50 }
 0x154   :  { %1449 = vmatprep.subr.bf16.mxu0 %v2735_v55 }
 0x155   :  { %1231 = vmatpush2.bf16.msra.mxu1 %v2096_v52 }
 0x156   :  { %1232 = vmatprep.subr.bf16.mxu1 %v2104_v57 }
 0x157   :  { %1450 = vmatpush2.bf16.msra.mxu0 %v2740_v56 }
 0x159   :  { %1233 = vmatpush2.bf16.msra.mxu1 %v2102_v59 }
 0x15a   :  { %1234 = vmatprep.subr.bf16.mxu1 %v2107_v0 }
 0x15d   :  { %1235 = vmatpush2.bf16.msra.mxu1 %v2105_v3 }
 0x15e   :  { %1236 = vmatprep.subr.bf16.mxu1 %v2110_v4 }
 0x161   :  { %1237 = vmatpush2.bf16.msra.mxu1 %v2108_v5 }
 0x162   :  { %1835 = vmatprep.subr.bf16.mxu1 %v2419_v58  ;;  %v1532_v58 = vld [vmem:[%s2865_s3 + $0x2] ss:$8 sm:$0x3] }
 0x163   :  { %v929_v42 = vrot.slane %v1532_v58, %v2429_v61  ;;  %v925_v51 = vrot.slane %v1532_v58, %v2426_v60 }
 0x1da   :  { %v883_v9 = vpop.f32.mrf.mxu0 }
 0x1dc   :  { %v885_v10 = vpop.f32.mrf.mxu0 }
 0x1de   :  { %v887_v13 = vpop.f32.mrf.mxu0 }
 0x1e0   :  { %v889_v14 = vpop.f32.mrf.mxu0 }
 0x1e2   :  { %v893_v25 = vpop.f32.mrf.mxu0 }
 0x1e4   :  { %v670_v21 = vpop.f32.mrf.mxu1  ;;  %v895_v52 = vpop.f32.mrf.mxu0 }
 0x1e5   :  { %v884_v28 = vadd.f32 %v883_v9, %v670_v21 }
 0x1e6   :  { %v672_v33 = vpop.f32.mrf.mxu1  ;;  %v897_v21 = vpop.f32.mrf.mxu0 }
 0x1e7   :  { %v886_v36 = vadd.f32 %v885_v10, %v672_v33  ;;  %v913_v48 = vmul.f32 %v906_v32, %v884_v28 }
 0x1e8   :  { %v674_v37 = vpop.f32.mrf.mxu1  ;;  %v899_v60 = vpop.f32.mrf.mxu0 }
 0x1e9   :  { %v914_v41 = vmul.f32 %v910_v23, %v886_v36  ;;  %v888_v46 = vadd.f32 %v887_v13, %v674_v37  ;;  %v932_v20 = vadd.f32 %v925_v51, %v913_v48 }
 0x1ea   :  { %v676_v57 = vpop.f32.mrf.mxu1 }
 0x1eb   :  { %v915_v59 = vmul.f32 %v906_v32, %v888_v46  ;;  %v890_v0 = vadd.f32 %v889_v14, %v676_v57  ;;  %v933_v4 = vadd.f32 %v929_v42, %v914_v41  ;;  %v940_v58 = vmax.f32 %v932_v20, 0.0 }
 0x1ec   :  { %v680_v3 = vpop.f32.mrf.mxu1 }
 0x1ed   :  { %v934_v5 = vadd.f32 %v925_v51, %v915_v59  ;;  %v916_v9 = vmul.f32 %v910_v23, %v890_v0  ;;  %v894_v56 = vadd.f32 %v893_v25, %v680_v3  ;;  %v941_v13 = vmax.f32 %v933_v4, 0.0 }
 0x1ee   :  { %v682_v10 = vpop.f32.mrf.mxu1 }
 0x1ef   :  { %v935_v33 = vadd.f32 %v929_v42, %v916_v9  ;;  %v942_v36 = vmax.f32 %v934_v5, 0.0  ;;  %v917_v55 = vmul.f32 %v906_v32, %v894_v56  ;;  %v896_v37 = vadd.f32 %v895_v52, %v682_v10 }
 0x1f0   :  { %v684_v61 = vpop.f32.mrf.mxu1  ;;  %v960_v5 = vrot.slane %v940_v58, 1 }
 0x1f1   :  { %v943_v28 = vmax.f32 %v935_v33, 0.0  ;;  %v936_v50 = vadd.f32 %v925_v51, %v917_v55  ;;  %v898_v46 = vadd.f32 %v897_v21, %v684_v61  ;;  %v961_v59 = vrot.slane %v942_v36, 1 }
 0x1f2   :  { %v686_v14 = vpop.f32.mrf.mxu1  ;;  %v1005_v0 = vpack.c.bf16 %v942_v36, %v940_v58  ;;  %v918_v25 = vmul.f32 %v910_v23, %v896_v37 }
 0x1f3   :  { %v900_v57 = vadd.f32 %v899_v60, %v686_v14  ;;  %v1006_v41 = vpack.c.bf16 %v943_v28, %v941_v13  ;;  %v944_v48 = vmax.f32 %v936_v50, 0.0  ;;  %v919_v49 = vmul.f32 %v906_v32, %v898_v46 }
 0x1f4   :  { %v966_v60 = vsel %vm105_vm0, %v960_v5, %v961_v59  ;;  %v949_v61 = vrot.slane %v943_v28, 7  ;;  %v937_v20 = vadd.f32 %v929_v42, %v918_v25 }
 0x1f5   :  { %v920_v3 = vmul.f32 %v910_v23, %v900_v57  ;;  %1451 = vmatprep.mubr.bf16.mxu0 %v1006_v41  ;;  %v962_v56 = vrot.slane %v944_v48, 1  ;;  %v938_v9 = vadd.f32 %v925_v51, %v919_v49  ;;  %v948_v23 = vrot.slane %v941_v13, 7 }
 0x1f6   :  { %1452 = vmatmul.mubr.bf16.vlgmr.msra.gmra.mxu0 %v1005_v0  ;;  %v945_v28 = vmax.f32 %v937_v20, 0.0 }
 0x1f7   :  { %v939_v4 = vadd.f32 %v929_v42, %v920_v3  ;;  %v946_v52 = vmax.f32 %v938_v9, 0.0  ;;  %v965_v55 = vsel %vm105_vm0, %v961_v59, %v962_v56  ;;  %v954_v36 = vsel %vm382_vm6, %v948_v23, %v949_v61 }
 0x1f8   :  { %v1785_v50 = vpack.c.bf16 %v965_v55, %v966_v60  ;;  %v950_v27 = vrot.slane %v945_v28, 7 }
 0x1f9   :  { %v947_v21 = vmax.f32 %v939_v4, 0.0  ;;  %v963_v32 = vrot.slane %v946_v52, 1  ;;  %v1007_v10 = vpack.c.bf16 %v946_v52, %v944_v48 }
 0x1fa   :  { %1786 = vmatprep.mubr.msk.bf16.mxu1 %vm2196_vm3, %v1785_v50  ;;  %v953_v46 = vsel %vm382_vm6, %v949_v61, %v950_v27 }
 0x1fb   :  { %v951_v33 = vrot.slane %v947_v21, 7  ;;  %v964_v49 = vsel %vm105_vm0, %v962_v56, %v963_v32  ;;  %v967_v51 = vsel %vm105_vm0, %v963_v32, %v960_v5  ;;  %v1008_v14 = vpack.c.bf16 %v947_v21, %v945_v28 }
 0x1fc   :  { %v1793_v58 = vpack.c.bf16 %v967_v51, %v964_v49 }
 0x1fd   :  { %v955_v42 = vsel %vm382_vm6, %v951_v33, %v948_v23  ;;  %v952_v13 = vsel %vm382_vm6, %v950_v27, %v951_v33 }
 0x1fe   :  { %v1789_v37 = vpack.c.bf16 %v954_v36, %v955_v42  ;;  %v1797_v47 = vpack.c.bf16 %v952_v13, %v953_v46 }
 0x200   :  { %1790 = vmatmul.mubr.msk.bf16.vlgmr.msra.gmra.mxu1 %vm2498_vm8, %v1789_v37 }
 0x201   :  { %1851 = vmatpush1.bf16.msra.mxu1 %v2442_v15  ;;  %1794 = vmatprep.mubr.msk.bf16.mxu1 %vm2258_vm5, %v1793_v58  ;;  %v2893_v15 = vld [vmem:[#allocation9_spill] sm:$0xff] }
 0x202   :  { %1836 = vmatprep.subr.bf16.mxu1 %v2447_v18  ;;  %v2894_v18 = vld [vmem:[#allocation10_spill] sm:$0xff] }
 0x205   :  { %1852 = vmatpush1.bf16.msra.mxu1 %v2458_v26 }
 0x206   :  { %1837 = vmatprep.subr.bf16.mxu1 %v2464_v30  ;;  %v1533_v30 = vld [vmem:[%s2865_s3 + $0x3] ss:$8 sm:$0x3] }
 0x208   :  { %1798 = vmatmul.mubr.msk.bf16.gmra.mxu1 %vm2547_vm10, %v1797_v47 }
 0x209   :  { %1853 = vmatpush1.bf16.msra.mxu1 %v2479_v40  ;;  %1461 = vmatprep.mubr.bf16.mxu1 %v1008_v14 }
 0x20a   :  { %1838 = vmatprep.subr.bf16.mxu1 %v2489_v44  ;;  %v1534_v44 = vld [vmem:[%s2865_s3 + $0x4] ss:$8 sm:$0x3] }
 0x20d   :  { %1854 = vmatpush1.bf16.msra.mxu1 %v2512_v53  ;;  %v2895_v53 = vld [vmem:[#allocation5_spill] sm:$0xff] }
 0x20e   :  { %1839 = vmatprep.subr.bf16.mxu1 %v2520_v54  ;;  %v1476_v54 = vrot.slane %v1533_v30, %v2895_v53  ;;  %v1495_v1 = vrot.slane %v1534_v44, %v2895_v53 }
 0x211   :  { %1855 = vmatpush1.bf16.msra.mxu1 %v2536_v62 }
 0x212   :  { %1840 = vmatprep.subr.bf16.mxu1 %v2542_v63 }
 0x215   :  { %1856 = vmatpush1.bf16.msra.mxu1 %v2561_v6  ;;  %v2896_v6 = vld [vmem:[#allocation6_spill] sm:$0xff] }
 0x216   :  { %1841 = vmatprep.subr.bf16.mxu1 %v2569_v7  ;;  %v1480_v7 = vrot.slane %v1533_v30, %v2896_v6 }
 0x219   :  { %1857 = vmatpush1.bf16.msra.mxu1 %v2581_v11 }
 0x21a   :  { %1842 = vmatprep.subr.bf16.mxu1 %v2587_v12 }
 0x21d   :  { %1858 = vmatpush1.bf16.msra.mxu1 %v2599_v16 }
 0x21e   :  { %1843 = vmatprep.subr.bf16.mxu1 %v2605_v17 }
 0x221   :  { %1859 = vmatpush2.bf16.msra.mxu1 %v2617_v22  ;;  %v1499_v22 = vrot.slane %v1534_v44, %v2896_v6 }
 0x222   :  { %1844 = vmatprep.subr.bf16.mxu1 %v2627_v24 }
 0x225   :  { %1860 = vmatpush2.bf16.msra.mxu1 %v2632_v19 }
 0x226   :  { %1845 = vmatprep.subr.bf16.mxu1 %v2645_v29 }
 0x229   :  { %1861 = vmatpush2.bf16.msra.mxu1 %v2650_v31 }
 0x22a   :  { %1846 = vmatprep.subr.bf16.mxu1 %v2663_v34 }
 0x22d   :  { %1862 = vmatpush2.bf16.msra.mxu1 %v2668_v35 }
 0x22e   :  { %1847 = vmatprep.subr.bf16.mxu1 %v2681_v38 }
 0x231   :  { %1863 = vmatpush2.bf16.msra.mxu1 %v2686_v39 }
 0x232   :  { %1848 = vmatprep.subr.bf16.mxu1 %v2699_v43 }
 0x235   :  { %1864 = vmatpush2.bf16.msra.mxu1 %v2704_v45 }
 0x236   :  { %1849 = vmatprep.subr.bf16.mxu1 %v2891_v8 }
 0x239   :  { %1865 = vmatpush2.bf16.msra.mxu1 %v2892_v2 }
 0x23a   :  { %1850 = vmatprep.subr.bf16.mxu1 %v2893_v15 }
 0x23d   :  { %1866 = vmatpush2.bf16.msra.mxu1 %v2894_v18 }
 0x240   :  { %1462 = vmatmul.mubr.bf16.vlgmr.msra.gmra.mxu1 %v1007_v10 }
 0x2b6   :  { %v1453_v26 = vpop.f32.mrf.mxu0 }
 0x2b8   :  { %v1455_v40 = vpop.f32.mrf.mxu0 }
 0x2ba   :  { %v1457_v11 = vpop.f32.mrf.mxu0 }
 0x2bc   :  { %v1459_v34 = vpop.f32.mrf.mxu0 }
 0x2c0   :  { %v1240_v62 = vpop.f32.mrf.mxu1 }
 0x2c1   :  { %v1454_v63 = vadd.f32 %v1453_v26, %v1240_v62 }
 0x2c2   :  { %v1242_v12 = vpop.f32.mrf.mxu1 }
 0x2c3   :  { %v1483_v16 = vmul.f32 %v1476_v54, %v1454_v63  ;;  %v1456_v17 = vadd.f32 %v1455_v40, %v1242_v12 }
 0x2c4   :  { %v1244_v24 = vpop.f32.mrf.mxu1 }
 0x2c5   :  { %v1502_v19 = vadd.f32 %v1495_v1, %v1483_v16  ;;  %v1484_v29 = vmul.f32 %v1480_v7, %v1456_v17  ;;  %v1458_v31 = vadd.f32 %v1457_v11, %v1244_v24 }
 0x2c6   :  { %v1246_v35 = vpop.f32.mrf.mxu1 }
 0x2c7   :  { %v1510_v38 = vmax.f32 %v1502_v19, 0.0  ;;  %v1503_v39 = vadd.f32 %v1499_v22, %v1484_v29  ;;  %v1485_v43 = vmul.f32 %v1476_v54, %v1458_v31  ;;  %v1460_v45 = vadd.f32 %v1459_v34, %v1246_v35 }
 0x2c8   :  { %v1250_v3 = vpop.f32.mrf.mxu1 }
 0x2c9   :  { %1518 = vst [vmem:[%s2866_s4] sm:$0xff] %v1510_v38  ;;  %v1511_v57 = vmax.f32 %v1503_v39, 0.0  ;;  %v1504_v41 = vadd.f32 %v1495_v1, %v1485_v43  ;;  %v1486_v59 = vmul.f32 %v1480_v7, %v1460_v45 }
 0x2ca   :  { %v1252_v5 = vpop.f32.mrf.mxu1 }
 0x2cb   :  { %1519 = vst [vmem:[%s2866_s4 + $0x8] sm:$0xff] %v1511_v57  ;;  %v1512_v0 = vmax.f32 %v1504_v41, 0.0  ;;  %v1505_v48 = vadd.f32 %v1499_v22, %v1486_v59 }
 0x2cc   :  { %v1254_v56 = vpop.f32.mrf.mxu1 }
 0x2cd   :  { %1520 = vst [vmem:[%s2866_s4 + $0x10] sm:$0xff] %v1512_v0  ;;  %v1513_v25 = vmax.f32 %v1505_v48, 0.0 }
 0x2ce   :  { %v1256_v9 = vpop.f32.mrf.mxu1 }
 0x2cf   :  { %1521 = vst [vmem:[%s2866_s4 + $0x18] sm:$0xff] %v1513_v25 }
 0x300   :  { %v1463_v4 = vpop.f32.mrf.mxu1 }
 0x301   :  { %v1464_v52 = vadd.f32 %v1463_v4, %v1250_v3 }
 0x302   :  { %v1465_v55 = vpop.f32.mrf.mxu1 }
 0x303   :  { %v1487_v60 = vmul.f32 %v1476_v54, %v1464_v52  ;;  %v1466_v61 = vadd.f32 %v1465_v55, %v1252_v5 }
 0x304   :  { %v1467_v20 = vpop.f32.mrf.mxu1 }
 0x305   :  { %v1506_v21 = vadd.f32 %v1495_v1, %v1487_v60  ;;  %v1488_v50 = vmul.f32 %v1480_v7, %v1466_v61  ;;  %v1468_v32 = vadd.f32 %v1467_v20, %v1254_v56 }
 0x306   :  { %v1469_v10 = vpop.f32.mrf.mxu1 }
 0x307   :  { %v1514_v23 = vmax.f32 %v1506_v21, 0.0  ;;  %v1507_v33 = vadd.f32 %v1499_v22, %v1488_v50  ;;  %v1489_v49 = vmul.f32 %v1476_v54, %v1468_v32  ;;  %v1470_v51 = vadd.f32 %v1469_v10, %v1256_v9 }
 0x309   :  { %1522 = vst [vmem:[%s2866_s4 + $0x20] sm:$0xff] %v1514_v23  ;;  %v1515_v36 = vmax.f32 %v1507_v33, 0.0  ;;  %v1508_v28 = vadd.f32 %v1495_v1, %v1489_v49  ;;  %v1490_v42 = vmul.f32 %v1480_v7, %v1470_v51 }
 0x30b   :  { %1523 = vst [vmem:[%s2866_s4 + $0x28] sm:$0xff] %v1515_v36  ;;  %v1516_v37 = vmax.f32 %v1508_v28, 0.0  ;;  %v1509_v58 = vadd.f32 %v1499_v22, %v1490_v42 }
 0x30d   :  { %1524 = vst [vmem:[%s2866_s4 + $0x30] sm:$0xff] %v1516_v37  ;;  %v1517_v27 = vmax.f32 %v1509_v58, 0.0 }
 0x30f   :  { %1525 = vst [vmem:[%s2866_s4 + $0x38] sm:$0xff] %v1517_v27 }
 0x310   :  { %1530 = vsyncpa [#allocation3], 1 }

</bundles_post_ra>
